<compile_context>
chip_gen: v7x
topology: tpu7x:2x2x1
jax: 0.10.0
libtpu: 0.0.40
codegen_flags: <defaults>
</compile_context>

<pallas_src>
import functools

import jax
import jax.numpy as jnp
from jax.experimental import pallas as pl
from jax.experimental.pallas import tpu as pltpu

_LANE = 128
_NEG_INF = -1e30


# ----------------------------------------------------------------------------
# helpers
# ----------------------------------------------------------------------------
def _round_up(x, k):
    return ((x + k - 1) // k) * k


def _pad_to(a, shape):
    return jnp.pad(a, [(0, t - s) for s, t in zip(a.shape, shape)])


def _dot(a, b):
    return jnp.dot(a, b, preferred_element_type=jnp.float32)


def _dot_tt(a, b):  # contract last dims: (M, K) x (N, K) -> (M, N), no explicit transpose
    return jax.lax.dot_general(a, b, (((1,), (1,)), ((), ())),
                               preferred_element_type=jnp.float32)


def _maybe_buffered_spec(block_shape, index_map, nbuf):
    # Deep buffering for the HBM-heavy dist stream; fall back gracefully if this
    # jax version does not expose pipeline_mode / pl.Buffered.
    try:
        return pl.BlockSpec(block_shape, index_map, pipeline_mode=pl.Buffered(nbuf))
    except Exception:  # pragma: no cover
        return pl.BlockSpec(block_shape, index_map)


# ----------------------------------------------------------------------------
# Kernel 1: AttentionalPropagation with MultiHeadedAttention ('self' type)
# grid = (n_tiles,), everything key-side kept resident (constant index maps)
# ----------------------------------------------------------------------------
def _mha_prop_kernel(x_ref, src_ref, wq_ref, bq_ref, wkv_ref, bkv_ref,
                     wm_ref, bm_ref, w1t_ref, w1b_ref, b1_ref, w2_ref, b2_ref,
                     out_ref, wts_ref, *, num_heads, head_dim, m_valid):
    bf16 = jnp.bfloat16
    xb = x_ref[...]                        # (tn, d_pad) bf16
    sb = src_ref[...]                      # (m_pad, d_pad) bf16
    tn, d_pad = xb.shape
    m_pad = sb.shape[0]

    # fused projections: q, and [k | v] in a single wide matmul (bf16 in, f32 acc)
    q = _dot(xb, wq_ref[...]) + bq_ref[...]            # (tn, d_pad)
    kv = _dot(sb, wkv_ref[...]) + bkv_ref[...]         # (m_pad, 2*d_pad)
    k = kv[:, :d_pad]
    v = kv[:, d_pad:]
    wm = wm_ref[...]

    mask_keys = m_valid < m_pad            # static python bool
    if mask_keys:
        key_ok = jax.lax.broadcasted_iota(jnp.int32, (tn, m_pad), 1) < m_valid

    scale = 1.0 / (head_dim ** 0.5)
    score_sum = jnp.zeros((tn, m_pad), jnp.float32)
    message = jnp.zeros((tn, d_pad), jnp.float32)
    for h in range(num_heads):             # static unrolled loop (num_heads is small)
        lo = h * head_dim
        hi = lo + head_dim
        qh = q[:, lo:hi].astype(bf16)
        kh = k[:, lo:hi].astype(bf16)
        vh = v[:, lo:hi].astype(bf16)
        s = _dot_tt(qh, kh) * scale                    # (tn, m_pad)
        score_sum = score_sum + s
        sm = jnp.where(key_ok, s, _NEG_INF) if mask_keys else s
        e = jnp.exp(sm - jnp.max(sm, axis=-1, keepdims=True))
        p = e * pl.reciprocal(jnp.sum(e, axis=-1, keepdims=True), approx=True)
        oh = _dot(p.astype(bf16), vh)                  # (tn, head_dim)
        # fold the merge conv per head: avoids the lane-axis concat of head outputs
        message = message + _dot(oh.astype(bf16), wm[lo:hi, :])
    message = message + bm_ref[...]

    # outer MLP([2d, 2d, d]) on cat([x, message]) without materializing the concat
    h1 = jnp.maximum(_dot(xb, w1t_ref[...])
                     + _dot(message.astype(bf16), w1b_ref[...])
                     + b1_ref[...], 0.0)
    out_ref[...] = _dot(h1.astype(bf16), w2_ref[...]) + b2_ref[...]
    wts_ref[...] = score_sum * (1.0 / num_heads)       # scores.mean(heads)


def prepare_self_params(p, num_heads):
    """One-time weight prep: head permutation, padding to lane multiples, bf16 cast."""
    d = p['wq'].shape[0]
    head_dim = d // num_heads
    d_pad = _round_up(d, _LANE)
    h1_pad = _round_up(2 * d, _LANE)
    # perm[new] = old channel (di*num_heads + h); matches PyTorch .view(1, dim, heads, -1)
    perm = jnp.array([di * num_heads + h
                      for h in range(num_heads) for di in range(head_dim)], jnp.int32)
    bf = jnp.bfloat16

    def pw(w, r, c):
        return _pad_to(w, (r, c)).astype(bf)

    def pb(b, c):
        return _pad_to(b[None, :], (1, c)).astype(jnp.float32)

    wk_p = _pad_to(p['wk'][:, perm], (d_pad, d_pad))
    wv_p = _pad_to(p['wv'][:, perm], (d_pad, d_pad))
    bk_p = _pad_to(p['bk'][perm][None, :], (1, d_pad))
    bv_p = _pad_to(p['bv'][perm][None, :], (1, d_pad))
    return dict(
        d=d, num_heads=num_heads, head_dim=head_dim, d_pad=d_pad, h1_pad=h1_pad,
        wq=pw(p['wq'][:, perm], d_pad, d_pad), bq=pb(p['bq'][perm], d_pad),
        wkv=jnp.concatenate([wk_p, wv_p], axis=1).astype(bf),
        bkv=jnp.concatenate([bk_p, bv_p], axis=1).astype(jnp.float32),
        wm=pw(p['wm'][perm, :], d_pad, d_pad), bm=pb(p['bm'], d_pad),
        w1t=pw(p['w1'][:d, :], d_pad, h1_pad),
        w1b=pw(p['w1'][d:, :], d_pad, h1_pad),
        b1=pb(p['b1'], h1_pad),
        w2=pw(p['w2'], h1_pad, d_pad), b2=pb(p['b2'], d_pad),
    )


def attentional_propagation_self(x, source, prep, *, tile_n=128):
    """x: (1, d, n), source: (1, d, m) in PyTorch NCL layout. Returns (out, weights)."""
    d, num_heads, head_dim = prep['d'], prep['num_heads'], prep['head_dim']
    d_pad, h1_pad = prep['d_pad'], prep['h1_pad']
    n, m = x.shape[2], source.shape[2]
    tile_n = _round_up(max(tile_n, 8), 8)
    n_pad = _round_up(n, tile_n)
    m_pad = _round_up(m, _LANE)

    x_p = _pad_to(x[0].T, (n_pad, d_pad)).astype(jnp.bfloat16)
    s_p = _pad_to(source[0].T, (m_pad, d_pad)).astype(jnp.bfloat16)

    kernel = functools.partial(_mha_prop_kernel, num_heads=num_heads,
                               head_dim=head_dim, m_valid=m)
    const = lambda i: (0, 0)
    out_p, wts_p = pl.pallas_call(
        kernel,
        out_shape=(jax.ShapeDtypeStruct((n_pad, d_pad), jnp.float32),
                   jax.ShapeDtypeStruct((n_pad, m_pad), jnp.float32)),
        grid=(n_pad // tile_n,),
        in_specs=[
            pl.BlockSpec((tile_n, d_pad), lambda i: (i, 0)),     # x tile
            pl.BlockSpec((m_pad, d_pad), const),                 # source (resident)
            pl.BlockSpec((d_pad, d_pad), const),                 # wq
            pl.BlockSpec((1, d_pad), const),                     # bq
            pl.BlockSpec((d_pad, 2 * d_pad), const),             # wkv (fused)
            pl.BlockSpec((1, 2 * d_pad), const),                 # bkv
            pl.BlockSpec((d_pad, d_pad), const),                 # wm
            pl.BlockSpec((1, d_pad), const),                     # bm
            pl.BlockSpec((d_pad, h1_pad), const),                # w1 top (x rows)
            pl.BlockSpec((d_pad, h1_pad), const),                # w1 bottom (message rows)
            pl.BlockSpec((1, h1_pad), const),                    # b1
            pl.BlockSpec((h1_pad, d_pad), const),                # w2
            pl.BlockSpec((1, d_pad), const),                     # b2
        ],
        out_specs=(pl.BlockSpec((tile_n, d_pad), lambda i: (i, 0)),
                   pl.BlockSpec((tile_n, m_pad), lambda i: (i, 0))),
        compiler_params=pltpu.CompilerParams(
            dimension_semantics=("parallel",),
            vmem_limit_bytes=48 * 1024 * 1024),
    )(x_p, s_p, prep['wq'], prep['bq'], prep['wkv'], prep['bkv'],
      prep['wm'], prep['bm'], prep['w1t'], prep['w1b'], prep['b1'],
      prep['w2'], prep['b2'])
    return out_p[:n, :d].T[None], wts_p[:n, :m][None]


# ----------------------------------------------------------------------------
# Kernel 2: AttentionalPropagation with MLPAttention ('cross' type)
# grid = (n_tiles, m_tiles); online softmax across m tiles; dist streamed per tile
# ----------------------------------------------------------------------------
def _mlp_attn_prop_kernel(x_ref, src_ref, dist_ref,
                          w1q_ref, w1k_ref, w1d_ref, b1_ref, w2_ref, b2_ref,
                          wo1t_ref, wo1b_ref, bo1_ref, wo2_ref, bo2_ref,
                          out_ref, wts_ref, m_sc, l_sc, acc_sc, *, m_valid):
    bf16 = jnp.bfloat16
    j = pl.program_id(1)
    n_kv = pl.num_programs(1)

    xb = x_ref[...]                        # (tn, d_pad) bf16
    sb = src_ref[...]                      # (tm, d_pad) bf16  (key == value == source)
    tn, d_pad = xb.shape
    tm = sb.shape[0]

    @pl.when(j == 0)
    def _init():
        m_sc[...] = jnp.full(m_sc.shape, _NEG_INF, jnp.float32)
        l_sc[...] = jnp.zeros(l_sc.shape, jnp.float32)
        acc_sc[...] = jnp.zeros(acc_sc.shape, jnp.float32)

    # attention MLP([3d, d, 1]): split the 3d->d conv into three matmuls + broadcast
    # add, so the (3d, n*m) concat of the reference is never materialized.
    a = _dot(xb, w1q_ref[...])                                   # (tn, d_pad)
    b = _dot(sb, w1k_ref[...])                                   # (tm, d_pad)
    c = _dot(dist_ref[...].reshape(tn * tm, d_pad), w1d_ref[...])  # (tn*tm, d_pad)
    hidden = (a[:, None, :] + b[None, :, :] + c.reshape(tn, tm, d_pad)
              + b1_ref[...][None, :, :])
    hidden = jnp.maximum(hidden, 0.0)                            # (tn, tm, d_pad)
    s_raw = jnp.sum(hidden * w2_ref[...][None, :, :], axis=-1) + b2_ref[0]
    wts_ref[...] = s_raw                                         # raw scores tile

    if m_valid % tm != 0:   # key padding only ever exists in the last m tile
        col = jax.lax.broadcasted_iota(jnp.int32, (tn, tm), 1) + j * tm
        s = jnp.where(col < m_valid, s_raw, _NEG_INF)
    else:
        s = s_raw

    # online (flash-style) softmax across the m tiles
    m_prev = m_sc[...]
    m_new = jnp.maximum(m_prev, jnp.max(s, axis=-1, keepdims=True))
    alpha = jnp.exp(m_prev - m_new)
    p = jnp.exp(s - m_new)
    l_sc[...] = alpha * l_sc[...] + jnp.sum(p, axis=-1, keepdims=True)
    acc_sc[...] = alpha * acc_sc[...] + _dot(p.astype(bf16), sb)
    m_sc[...] = m_new

    @pl.when(j == n_kv - 1)
    def _finalize():
        message = acc_sc[...] * pl.reciprocal(l_sc[...], approx=True)
        h1 = jnp.maximum(_dot(xb, wo1t_ref[...])
                         + _dot(message.astype(bf16), wo1b_ref[...])
                         + bo1_ref[...], 0.0)
        out_ref[...] = _dot(h1.astype(bf16), wo2_ref[...]) + bo2_ref[...]


def prepare_cross_params(p):
    d = p['w1q'].shape[0]
    d_pad = _round_up(d, _LANE)
    h1_pad = _round_up(2 * d, _LANE)
    bf = jnp.bfloat16

    def pw(w, r, c):
        return _pad_to(w, (r, c)).astype(bf)

    def pb(b, c):
        return _pad_to(b[None, :], (1, c)).astype(jnp.float32)

    return dict(
        d=d, d_pad=d_pad, h1_pad=h1_pad,
        w1q=pw(p['w1q'], d_pad, d_pad),
        w1k=pw(p['w1k'], d_pad, d_pad),
        w1d=pw(p['w1d'], d_pad, d_pad),
        b1=pb(p['b1'], d_pad),
        w2=pb(p['w2'], d_pad),                           # kept f32 (VPU reduce weight)
        b2=p['b2'].reshape(1).astype(jnp.float32),       # scalar, lives in SMEM
        wo1t=pw(p['wo1'][:d, :], d_pad, h1_pad),
        wo1b=pw(p['wo1'][d:, :], d_pad, h1_pad),
        bo1=pb(p['bo1'], h1_pad),
        wo2=pw(p['wo2'], h1_pad, d_pad),
        bo2=pb(p['bo2'], d_pad),
    )


def attentional_propagation_cross(x, source, dist, prep, *, tile_n=8, tile_m=128):
    """x: (1, d, n), source: (1, d, m), dist: (1, d, n*m) in PyTorch NCL layout."""
    d, d_pad, h1_pad = prep['d'], prep['d_pad'], prep['h1_pad']
    n, m = x.shape[2], source.shape[2]
    tile_n = _round_up(max(tile_n, 8), 8)
    tile_m = _round_up(max(tile_m, _LANE), _LANE)
    n_pad = _round_up(n, tile_n)
    m_pad = _round_up(m, tile_m)

    x_p = _pad_to(x[0].T, (n_pad, d_pad)).astype(jnp.bfloat16)
    s_p = _pad_to(source[0].T, (m_pad, d_pad)).astype(jnp.bfloat16)
    d3 = _pad_to(dist[0].T.reshape(n, m, d), (n_pad, m_pad, d_pad)).astype(jnp.bfloat16)

    kernel = functools.partial(_mlp_attn_prop_kernel, m_valid=m)
    const = lambda i, j: (0, 0)
    out_p, wts_p = pl.pallas_call(
        kernel,
        out_shape=(jax.ShapeDtypeStruct((n_pad, d_pad), jnp.float32),
                   jax.ShapeDtypeStruct((n_pad, m_pad), jnp.float32)),
        grid=(n_pad // tile_n, m_pad // tile_m),
        in_specs=[
            pl.BlockSpec((tile_n, d_pad), lambda i, j: (i, 0)),          # x tile
            pl.BlockSpec((tile_m, d_pad), lambda i, j: (j, 0)),          # source tile
            _maybe_buffered_spec((tile_n, tile_m, d_pad),
                                 lambda i, j: (i, j, 0), 3),             # dist stream
            pl.BlockSpec((d_pad, d_pad), const),                         # w1q
            pl.BlockSpec((d_pad, d_pad), const),                         # w1k
            pl.BlockSpec((d_pad, d_pad), const),                         # w1d
            pl.BlockSpec((1, d_pad), const),                             # b1
            pl.BlockSpec((1, d_pad), const),                             # w2 (row)
            pl.BlockSpec(memory_space=pltpu.MemorySpace.SMEM),           # b2 scalar
            pl.BlockSpec((d_pad, h1_pad), const),                        # wo1 top
            pl.BlockSpec((d_pad, h1_pad), const),                        # wo1 bottom
            pl.BlockSpec((1, h1_pad), const),                            # bo1
            pl.BlockSpec((h1_pad, d_pad), const),                        # wo2
            pl.BlockSpec((1, d_pad), const),                             # bo2
        ],
        out_specs=(pl.BlockSpec((tile_n, d_pad), lambda i, j: (i, 0)),
                   pl.BlockSpec((tile_n, tile_m), lambda i, j: (i, j))),
        scratch_shapes=[pltpu.VMEM((tile_n, 1), jnp.float32),   # running max
                        pltpu.VMEM((tile_n, 1), jnp.float32),   # running sum
                        pltpu.VMEM((tile_n, d_pad), jnp.float32)],  # output accumulator
        compiler_params=pltpu.CompilerParams(
            dimension_semantics=("parallel", "arbitrary"),
            vmem_limit_bytes=48 * 1024 * 1024),
    )(x_p, s_p, d3, prep['w1q'], prep['w1k'], prep['w1d'], prep['b1'],
      prep['w2'], prep['b2'], prep['wo1t'], prep['wo1b'], prep['bo1'],
      prep['wo2'], prep['bo2'])
    return out_p[:n, :d].T[None], wts_p[:n, :m][None]


# ----------------------------------------------------------------------------
# Deterministic synthetic params (conv weights stored as (Cin, Cout))
# ----------------------------------------------------------------------------
def _randn(key, shape, scale=0.1):
    return scale * jax.random.normal(key, shape, dtype=jnp.float32)


def init_self_params(key, d):
    ks = jax.random.split(key, 11)
    return dict(
        wq=_randn(ks[0], (d, d)), bq=_randn(ks[1], (d,)),
        wk=_randn(ks[2], (d, d)), bk=_randn(ks[3], (d,)),
        wv=_randn(ks[4], (d, d)), bv=_randn(ks[5], (d,)),
        wm=_randn(ks[6], (d, d)), bm=_randn(ks[7], (d,)),
        w1=_randn(ks[8], (2 * d, 2 * d)), b1=_randn(ks[9], (2 * d,)),
        w2=_randn(ks[10], (2 * d, d)),
        b2=jnp.zeros((d,), jnp.float32),   # nn.init.constant_(self.mlp[-1].bias, 0.0)
    )


def init_cross_params(key, d):
    ks = jax.random.split(key, 9)
    return dict(
        w1q=_randn(ks[0], (d, d)), w1k=_randn(ks[1], (d, d)), w1d=_randn(ks[2], (d, d)),
        b1=_randn(ks[3], (d,)),
        w2=_randn(ks[4], (d,)), b2=_randn(ks[5], (1,)),
        wo1=_randn(ks[6], (2 * d, 2 * d)), bo1=_randn(ks[7], (2 * d,)),
        wo2=_randn(ks[8], (2 * d, d)),
        bo2=jnp.zeros((d,), jnp.float32),
    )


# ----------------------------------------------------------------------------
# Pure-JAX references (mirror the PyTorch forward exactly, mask=None path)
# ----------------------------------------------------------------------------
def _conv1x1(inp, w, b):   # inp (1, Cin, L), w (Cin, Cout), b (Cout,)
    return jnp.einsum('bcl,co->bol', inp, w) + b[None, :, None]


def ref_self(x, source, p, num_heads):
    d = x.shape[1]
    dim = d // num_heads
    q = _conv1x1(x, p['wq'], p['bq']).reshape(1, dim, num_heads, -1)
    k = _conv1x1(source, p['wk'], p['bk']).reshape(1, dim, num_heads, -1)
    v = _conv1x1(source, p['wv'], p['bv']).reshape(1, dim, num_heads, -1)
    scores = jnp.einsum('bdhn,bdhm->bhnm', q, k) / dim ** 0.5
    prob = jax.nn.softmax(scores, axis=-1)
    o = jnp.einsum('bhnm,bdhm->bdhn', prob, v).reshape(1, d, -1)
    message = _conv1x1(o, p['wm'], p['bm'])
    cat = jnp.concatenate([x, message], axis=1)
    h1 = jax.nn.relu(_conv1x1(cat, p['w1'], p['b1']))
    return _conv1x1(h1, p['w2'], p['b2']), scores.mean(axis=1)


def ref_cross(x, source, dist, p):
    d, n = x.shape[1], x.shape[2]
    m = source.shape[2]
    q_rep = jnp.repeat(x, m, axis=2)
    k_rep = jnp.tile(source, (1, 1, n))
    cat = jnp.concatenate([q_rep, k_rep, dist], axis=1)          # (1, 3d, n*m)
    w1 = jnp.concatenate([p['w1q'], p['w1k'], p['w1d']], axis=0)
    h = jax.nn.relu(_conv1x1(cat, w1, p['b1']))
    scores = _conv1x1(h, p['w2'][:, None], p['b2']).reshape(1, n, m)
    prob = jax.nn.softmax(scores, axis=-1)
    message = jnp.einsum('bnm,bdm->bdn', prob, source)
    cat2 = jnp.concatenate([x, message], axis=1)
    h1 = jax.nn.relu(_conv1x1(cat2, p['wo1'], p['bo1']))
    return _conv1x1(h1, p['wo2'], p['bo2']), scores


# ----------------------------------------------------------------------------
if __name__ == "__main__":
    key = jax.random.PRNGKey(0)
    k1, k2, k3, k4, k5, k6, k7 = jax.random.split(key, 7)
    d, num_heads = 32, 4

    # ---- 'self' path (MultiHeadedAttention): 2 row tiles, masked key padding ----
    n, m = 12, 10
    x = jax.random.normal(k1, (1, d, n), jnp.float32)
    source = jax.random.normal(k2, (1, d, m), jnp.float32)
    p_self = init_self_params(k3, d)
    prep_self = prepare_self_params(p_self, num_heads)
    out_s, w_s = attentional_propagation_self(x, source, prep_self, tile_n=8)
    jax.block_until_ready((out_s, w_s))
    ref_o, ref_w = ref_self(x, source, p_self, num_heads)
    assert out_s.shape == (1, d, n) and w_s.shape == (1, n, m)
    assert jnp.allclose(out_s, ref_o, atol=5e-2, rtol=5e-2), \
        float(jnp.max(jnp.abs(out_s - ref_o)))
    assert jnp.allclose(w_s, ref_w, atol=5e-2, rtol=5e-2), \
        float(jnp.max(jnp.abs(w_s - ref_w)))

    # ---- 'cross' path (MLPAttention): 2 row tiles x 2 key tiles (online softmax) ----
    n_c, m_c = 12, 160
    xc = jax.random.normal(k4, (1, d, n_c), jnp.float32)
    sc = jax.random.normal(k5, (1, d, m_c), jnp.float32)
    dist = jax.random.normal(k6, (1, d, n_c * m_c), jnp.float32)
    p_cross = init_cross_params(k7, d)
    prep_cross = prepare_cross_params(p_cross)
    out_c, w_c = attentional_propagation_cross(xc, sc, dist, prep_cross,
                                               tile_n=8, tile_m=128)
    jax.block_until_ready((out_c, w_c))
    ref_oc, ref_wc = ref_cross(xc, sc, dist, p_cross)
    assert out_c.shape == (1, d, n_c) and w_c.shape == (1, n_c, m_c)
    assert jnp.allclose(out_c, ref_oc, atol=5e-2, rtol=5e-2), \
        float(jnp.max(jnp.abs(out_c - ref_oc)))
    assert jnp.allclose(w_c, ref_wc, atol=5e-2, rtol=5e-2), \
        float(jnp.max(jnp.abs(w_c - ref_wc)))

    print("KERNEL_OK")
</pallas_src>

<mosaic_0001>
module attributes {stable_mosaic.version = 11 : i64} {
  func.func @_mha_prop_kernel(%arg0: i32, %arg1: memref<8x128xbf16, #tpu.memory_space<vmem>>, %arg2: memref<128x128xbf16, #tpu.memory_space<vmem>>, %arg3: memref<128x128xbf16, #tpu.memory_space<vmem>>, %arg4: memref<1x128xf32, #tpu.memory_space<vmem>>, %arg5: memref<128x256xbf16, #tpu.memory_space<vmem>>, %arg6: memref<1x256xf32, #tpu.memory_space<vmem>>, %arg7: memref<128x128xbf16, #tpu.memory_space<vmem>>, %arg8: memref<1x128xf32, #tpu.memory_space<vmem>>, %arg9: memref<128x128xbf16, #tpu.memory_space<vmem>>, %arg10: memref<128x128xbf16, #tpu.memory_space<vmem>>, %arg11: memref<1x128xf32, #tpu.memory_space<vmem>>, %arg12: memref<128x128xbf16, #tpu.memory_space<vmem>>, %arg13: memref<1x128xf32, #tpu.memory_space<vmem>>, %arg14: memref<8x128xf32, #tpu.memory_space<vmem>>, %arg15: memref<8x128xf32, #tpu.memory_space<vmem>>) attributes {dimension_semantics = [#tpu.dimension_semantics<parallel>], iteration_bounds = array<i64: 2>, scalar_prefetch = 0 : i64, scratch_operands = 0 : i64, tpu.core_type = #tpu.core_type<tc>, window_params = [{transform_indices = @transform_0, window_bounds = array<i64: 8, 128>}, {pipeline_mode = #tpu.pipeline_mode<synchronous>, transform_indices = @transform_1, window_bounds = array<i64: 128, 128>}, {pipeline_mode = #tpu.pipeline_mode<synchronous>, transform_indices = @transform_2, window_bounds = array<i64: 128, 128>}, {pipeline_mode = #tpu.pipeline_mode<synchronous>, transform_indices = @transform_3, window_bounds = array<i64: 1, 128>}, {pipeline_mode = #tpu.pipeline_mode<synchronous>, transform_indices = @transform_4, window_bounds = array<i64: 128, 256>}, {pipeline_mode = #tpu.pipeline_mode<synchronous>, transform_indices = @transform_5, window_bounds = array<i64: 1, 256>}, {pipeline_mode = #tpu.pipeline_mode<synchronous>, transform_indices = @transform_6, window_bounds = array<i64: 128, 128>}, {pipeline_mode = #tpu.pipeline_mode<synchronous>, transform_indices = @transform_7, window_bounds = array<i64: 1, 128>}, {pipeline_mode = #tpu.pipeline_mode<synchronous>, transform_indices = @transform_8, window_bounds = array<i64: 128, 128>}, {pipeline_mode = #tpu.pipeline_mode<synchronous>, transform_indices = @transform_9, window_bounds = array<i64: 128, 128>}, {pipeline_mode = #tpu.pipeline_mode<synchronous>, transform_indices = @transform_10, window_bounds = array<i64: 1, 128>}, {pipeline_mode = #tpu.pipeline_mode<synchronous>, transform_indices = @transform_11, window_bounds = array<i64: 128, 128>}, {pipeline_mode = #tpu.pipeline_mode<synchronous>, transform_indices = @transform_12, window_bounds = array<i64: 1, 128>}, {transform_indices = @transform_13, window_bounds = array<i64: 8, 128>}, {transform_indices = @transform_14, window_bounds = array<i64: 8, 128>}]} {
    %c0 = arith.constant 0 : index
    %c0_0 = arith.constant 0 : index
    %0 = vector.load %arg1[%c0, %c0_0] : memref<8x128xbf16, #tpu.memory_space<vmem>>, vector<8x128xbf16>
    %c0_1 = arith.constant 0 : index
    %c0_2 = arith.constant 0 : index
    %1 = vector.load %arg2[%c0_1, %c0_2] : memref<128x128xbf16, #tpu.memory_space<vmem>>, vector<128x128xbf16>
    %c0_3 = arith.constant 0 : index
    %c0_4 = arith.constant 0 : index
    %2 = vector.load %arg3[%c0_3, %c0_4] : memref<128x128xbf16, #tpu.memory_space<vmem>>, vector<128x128xbf16>
    %cst = arith.constant dense<0.000000e+00> : vector<8x128xf32>
    %3 = tpu.matmul %0, %2, %cst {dimension_numbers = #tpu.dot_dimension_numbers<[1], [0], [0], [1], [0, 0, 1, 1], [], []>} : vector<8x128xbf16>, vector<128x128xbf16>, vector<8x128xf32> -> vector<8x128xf32>
    %c0_5 = arith.constant 0 : index
    %c0_6 = arith.constant 0 : index
    %4 = vector.load %arg4[%c0_5, %c0_6] : memref<1x128xf32, #tpu.memory_space<vmem>>, vector<1x128xf32>
    %5 = vector.broadcast %4 : vector<1x128xf32> to vector<8x128xf32>
    %6 = arith.addf %3, %5 : vector<8x128xf32>
    %c0_7 = arith.constant 0 : index
    %c0_8 = arith.constant 0 : index
    %7 = vector.load %arg5[%c0_7, %c0_8] : memref<128x256xbf16, #tpu.memory_space<vmem>>, vector<128x256xbf16>
    %cst_9 = arith.constant dense<0.000000e+00> : vector<128x256xf32>
    %8 = tpu.matmul %1, %7, %cst_9 {dimension_numbers = #tpu.dot_dimension_numbers<[1], [0], [0], [1], [0, 0, 1, 1], [], []>} : vector<128x128xbf16>, vector<128x256xbf16>, vector<128x256xf32> -> vector<128x256xf32>
    %c0_10 = arith.constant 0 : index
    %c0_11 = arith.constant 0 : index
    %9 = vector.load %arg6[%c0_10, %c0_11] : memref<1x256xf32, #tpu.memory_space<vmem>>, vector<1x256xf32>
    %10 = vector.broadcast %9 : vector<1x256xf32> to vector<128x256xf32>
    %11 = arith.addf %8, %10 : vector<128x256xf32>
    %12 = vector.extract_strided_slice %11 {offsets = [0, 0], sizes = [128, 128], strides = [1, 1]} : vector<128x256xf32> to vector<128x128xf32>
    %13 = vector.extract_strided_slice %11 {offsets = [0, 128], sizes = [128, 128], strides = [1, 1]} : vector<128x256xf32> to vector<128x128xf32>
    %c0_12 = arith.constant 0 : index
    %c0_13 = arith.constant 0 : index
    %14 = vector.load %arg7[%c0_12, %c0_13] : memref<128x128xbf16, #tpu.memory_space<vmem>>, vector<128x128xbf16>
    %15 = tpu.iota {dimensions = array<i32: 1>} : vector<8x128xi32>
    %c10_i32 = arith.constant 10 : i32
    %16 = vector.broadcast %c10_i32 : i32 to vector<8x128xi32>
    %17 = arith.cmpi slt, %15, %16 : vector<8x128xi32>
    %cst_14 = arith.constant 0.000000e+00 : f32
    %18 = vector.broadcast %cst_14 : f32 to vector<8x128xf32>
    %cst_15 = arith.constant 0.000000e+00 : f32
    %19 = vector.broadcast %cst_15 : f32 to vector<8x128xf32>
    %20 = vector.extract_strided_slice %6 {offsets = [0, 0], sizes = [8, 8], strides = [1, 1]} : vector<8x128xf32> to vector<8x8xf32>
    %21 = arith.truncf %20 : vector<8x8xf32> to vector<8x8xbf16>
    %22 = vector.extract_strided_slice %12 {offsets = [0, 0], sizes = [128, 8], strides = [1, 1]} : vector<128x128xf32> to vector<128x8xf32>
    %23 = arith.truncf %22 : vector<128x8xf32> to vector<128x8xbf16>
    %24 = vector.extract_strided_slice %13 {offsets = [0, 0], sizes = [128, 8], strides = [1, 1]} : vector<128x128xf32> to vector<128x8xf32>
    %25 = arith.truncf %24 : vector<128x8xf32> to vector<128x8xbf16>
    %cst_16 = arith.constant dense<0.000000e+00> : vector<8x128xf32>
    %26 = tpu.matmul %21, %23, %cst_16 {dimension_numbers = #tpu.dot_dimension_numbers<[1], [1], [0], [0], [0, 0, 1, 0], [], []>} : vector<8x8xbf16>, vector<128x8xbf16>, vector<8x128xf32> -> vector<8x128xf32>
    %cst_17 = arith.constant 0.353553385 : f32
    %27 = vector.broadcast %cst_17 : f32 to vector<8x128xf32>
    %28 = arith.mulf %26, %27 : vector<8x128xf32>
    %29 = arith.addf %18, %28 : vector<8x128xf32>
    %cst_18 = arith.constant -1.000000e+30 : f32
    %30 = vector.broadcast %cst_18 : f32 to vector<8x128xf32>
    %31 = arith.select %17, %28, %30 : vector<8x128xi1>, vector<8x128xf32>
    %cst_19 = arith.constant dense<0xFF800000> : vector<8xf32>
    %32 = vector.multi_reduction <maximumf>, %31, %cst_19 [1] : vector<8x128xf32> to vector<8xf32>
    %33 = vector.shape_cast %32 : vector<8xf32> to vector<8x1xf32>
    %34 = vector.broadcast %33 : vector<8x1xf32> to vector<8x128xf32>
    %35 = arith.subf %31, %34 : vector<8x128xf32>
    %36 = math.exp %35 : vector<8x128xf32>
    %cst_20 = arith.constant dense<0.000000e+00> : vector<8xf32>
    %37 = vector.multi_reduction <add>, %36, %cst_20 [1] : vector<8x128xf32> to vector<8xf32>
    %38 = vector.shape_cast %37 : vector<8xf32> to vector<8x1xf32>
    %39 = tpu.reciprocal %38 {approx = true} : vector<8x1xf32> -> vector<8x1xf32>
    %40 = vector.broadcast %39 : vector<8x1xf32> to vector<8x128xf32>
    %41 = arith.mulf %36, %40 : vector<8x128xf32>
    %42 = arith.truncf %41 : vector<8x128xf32> to vector<8x128xbf16>
    %cst_21 = arith.constant dense<0.000000e+00> : vector<8x8xf32>
    %43 = tpu.matmul %42, %25, %cst_21 {dimension_numbers = #tpu.dot_dimension_numbers<[1], [0], [0], [1], [0, 0, 1, 1], [], []>} : vector<8x128xbf16>, vector<128x8xbf16>, vector<8x8xf32> -> vector<8x8xf32>
    %44 = arith.truncf %43 : vector<8x8xf32> to vector<8x8xbf16>
    %45 = vector.extract_strided_slice %14 {offsets = [0, 0], sizes = [8, 128], strides = [1, 1]} : vector<128x128xbf16> to vector<8x128xbf16>
    %cst_22 = arith.constant dense<0.000000e+00> : vector<8x128xf32>
    %46 = tpu.matmul %44, %45, %cst_22 {dimension_numbers = #tpu.dot_dimension_numbers<[1], [0], [0], [1], [0, 0, 1, 1], [], []>} : vector<8x8xbf16>, vector<8x128xbf16>, vector<8x128xf32> -> vector<8x128xf32>
    %47 = arith.addf %19, %46 : vector<8x128xf32>
    %48 = vector.extract_strided_slice %6 {offsets = [0, 8], sizes = [8, 8], strides = [1, 1]} : vector<8x128xf32> to vector<8x8xf32>
    %49 = arith.truncf %48 : vector<8x8xf32> to vector<8x8xbf16>
    %50 = vector.extract_strided_slice %12 {offsets = [0, 8], sizes = [128, 8], strides = [1, 1]} : vector<128x128xf32> to vector<128x8xf32>
    %51 = arith.truncf %50 : vector<128x8xf32> to vector<128x8xbf16>
    %52 = vector.extract_strided_slice %13 {offsets = [0, 8], sizes = [128, 8], strides = [1, 1]} : vector<128x128xf32> to vector<128x8xf32>
    %53 = arith.truncf %52 : vector<128x8xf32> to vector<128x8xbf16>
    %cst_23 = arith.constant dense<0.000000e+00> : vector<8x128xf32>
    %54 = tpu.matmul %49, %51, %cst_23 {dimension_numbers = #tpu.dot_dimension_numbers<[1], [1], [0], [0], [0, 0, 1, 0], [], []>} : vector<8x8xbf16>, vector<128x8xbf16>, vector<8x128xf32> -> vector<8x128xf32>
    %cst_24 = arith.constant 0.353553385 : f32
    %55 = vector.broadcast %cst_24 : f32 to vector<8x128xf32>
    %56 = arith.mulf %54, %55 : vector<8x128xf32>
    %57 = arith.addf %29, %56 : vector<8x128xf32>
    %cst_25 = arith.constant -1.000000e+30 : f32
    %58 = vector.broadcast %cst_25 : f32 to vector<8x128xf32>
    %59 = arith.select %17, %56, %58 : vector<8x128xi1>, vector<8x128xf32>
    %cst_26 = arith.constant dense<0xFF800000> : vector<8xf32>
    %60 = vector.multi_reduction <maximumf>, %59, %cst_26 [1] : vector<8x128xf32> to vector<8xf32>
    %61 = vector.shape_cast %60 : vector<8xf32> to vector<8x1xf32>
    %62 = vector.broadcast %61 : vector<8x1xf32> to vector<8x128xf32>
    %63 = arith.subf %59, %62 : vector<8x128xf32>
    %64 = math.exp %63 : vector<8x128xf32>
    %cst_27 = arith.constant dense<0.000000e+00> : vector<8xf32>
    %65 = vector.multi_reduction <add>, %64, %cst_27 [1] : vector<8x128xf32> to vector<8xf32>
    %66 = vector.shape_cast %65 : vector<8xf32> to vector<8x1xf32>
    %67 = tpu.reciprocal %66 {approx = true} : vector<8x1xf32> -> vector<8x1xf32>
    %68 = vector.broadcast %67 : vector<8x1xf32> to vector<8x128xf32>
    %69 = arith.mulf %64, %68 : vector<8x128xf32>
    %70 = arith.truncf %69 : vector<8x128xf32> to vector<8x128xbf16>
    %cst_28 = arith.constant dense<0.000000e+00> : vector<8x8xf32>
    %71 = tpu.matmul %70, %53, %cst_28 {dimension_numbers = #tpu.dot_dimension_numbers<[1], [0], [0], [1], [0, 0, 1, 1], [], []>} : vector<8x128xbf16>, vector<128x8xbf16>, vector<8x8xf32> -> vector<8x8xf32>
    %72 = arith.truncf %71 : vector<8x8xf32> to vector<8x8xbf16>
    %73 = vector.extract_strided_slice %14 {offsets = [8, 0], sizes = [8, 128], strides = [1, 1]} : vector<128x128xbf16> to vector<8x128xbf16>
    %cst_29 = arith.constant dense<0.000000e+00> : vector<8x128xf32>
    %74 = tpu.matmul %72, %73, %cst_29 {dimension_numbers = #tpu.dot_dimension_numbers<[1], [0], [0], [1], [0, 0, 1, 1], [], []>} : vector<8x8xbf16>, vector<8x128xbf16>, vector<8x128xf32> -> vector<8x128xf32>
    %75 = arith.addf %47, %74 : vector<8x128xf32>
    %76 = vector.extract_strided_slice %6 {offsets = [0, 16], sizes = [8, 8], strides = [1, 1]} : vector<8x128xf32> to vector<8x8xf32>
    %77 = arith.truncf %76 : vector<8x8xf32> to vector<8x8xbf16>
    %78 = vector.extract_strided_slice %12 {offsets = [0, 16], sizes = [128, 8], strides = [1, 1]} : vector<128x128xf32> to vector<128x8xf32>
    %79 = arith.truncf %78 : vector<128x8xf32> to vector<128x8xbf16>
    %80 = vector.extract_strided_slice %13 {offsets = [0, 16], sizes = [128, 8], strides = [1, 1]} : vector<128x128xf32> to vector<128x8xf32>
    %81 = arith.truncf %80 : vector<128x8xf32> to vector<128x8xbf16>
    %cst_30 = arith.constant dense<0.000000e+00> : vector<8x128xf32>
    %82 = tpu.matmul %77, %79, %cst_30 {dimension_numbers = #tpu.dot_dimension_numbers<[1], [1], [0], [0], [0, 0, 1, 0], [], []>} : vector<8x8xbf16>, vector<128x8xbf16>, vector<8x128xf32> -> vector<8x128xf32>
    %cst_31 = arith.constant 0.353553385 : f32
    %83 = vector.broadcast %cst_31 : f32 to vector<8x128xf32>
    %84 = arith.mulf %82, %83 : vector<8x128xf32>
    %85 = arith.addf %57, %84 : vector<8x128xf32>
    %cst_32 = arith.constant -1.000000e+30 : f32
    %86 = vector.broadcast %cst_32 : f32 to vector<8x128xf32>
    %87 = arith.select %17, %84, %86 : vector<8x128xi1>, vector<8x128xf32>
    %cst_33 = arith.constant dense<0xFF800000> : vector<8xf32>
    %88 = vector.multi_reduction <maximumf>, %87, %cst_33 [1] : vector<8x128xf32> to vector<8xf32>
    %89 = vector.shape_cast %88 : vector<8xf32> to vector<8x1xf32>
    %90 = vector.broadcast %89 : vector<8x1xf32> to vector<8x128xf32>
    %91 = arith.subf %87, %90 : vector<8x128xf32>
    %92 = math.exp %91 : vector<8x128xf32>
    %cst_34 = arith.constant dense<0.000000e+00> : vector<8xf32>
    %93 = vector.multi_reduction <add>, %92, %cst_34 [1] : vector<8x128xf32> to vector<8xf32>
    %94 = vector.shape_cast %93 : vector<8xf32> to vector<8x1xf32>
    %95 = tpu.reciprocal %94 {approx = true} : vector<8x1xf32> -> vector<8x1xf32>
    %96 = vector.broadcast %95 : vector<8x1xf32> to vector<8x128xf32>
    %97 = arith.mulf %92, %96 : vector<8x128xf32>
    %98 = arith.truncf %97 : vector<8x128xf32> to vector<8x128xbf16>
    %cst_35 = arith.constant dense<0.000000e+00> : vector<8x8xf32>
    %99 = tpu.matmul %98, %81, %cst_35 {dimension_numbers = #tpu.dot_dimension_numbers<[1], [0], [0], [1], [0, 0, 1, 1], [], []>} : vector<8x128xbf16>, vector<128x8xbf16>, vector<8x8xf32> -> vector<8x8xf32>
    %100 = arith.truncf %99 : vector<8x8xf32> to vector<8x8xbf16>
    %101 = vector.extract_strided_slice %14 {offsets = [16, 0], sizes = [8, 128], strides = [1, 1]} : vector<128x128xbf16> to vector<8x128xbf16>
    %cst_36 = arith.constant dense<0.000000e+00> : vector<8x128xf32>
    %102 = tpu.matmul %100, %101, %cst_36 {dimension_numbers = #tpu.dot_dimension_numbers<[1], [0], [0], [1], [0, 0, 1, 1], [], []>} : vector<8x8xbf16>, vector<8x128xbf16>, vector<8x128xf32> -> vector<8x128xf32>
    %103 = arith.addf %75, %102 : vector<8x128xf32>
    %104 = vector.extract_strided_slice %6 {offsets = [0, 24], sizes = [8, 8], strides = [1, 1]} : vector<8x128xf32> to vector<8x8xf32>
    %105 = arith.truncf %104 : vector<8x8xf32> to vector<8x8xbf16>
    %106 = vector.extract_strided_slice %12 {offsets = [0, 24], sizes = [128, 8], strides = [1, 1]} : vector<128x128xf32> to vector<128x8xf32>
    %107 = arith.truncf %106 : vector<128x8xf32> to vector<128x8xbf16>
    %108 = vector.extract_strided_slice %13 {offsets = [0, 24], sizes = [128, 8], strides = [1, 1]} : vector<128x128xf32> to vector<128x8xf32>
    %109 = arith.truncf %108 : vector<128x8xf32> to vector<128x8xbf16>
    %cst_37 = arith.constant dense<0.000000e+00> : vector<8x128xf32>
    %110 = tpu.matmul %105, %107, %cst_37 {dimension_numbers = #tpu.dot_dimension_numbers<[1], [1], [0], [0], [0, 0, 1, 0], [], []>} : vector<8x8xbf16>, vector<128x8xbf16>, vector<8x128xf32> -> vector<8x128xf32>
    %cst_38 = arith.constant 0.353553385 : f32
    %111 = vector.broadcast %cst_38 : f32 to vector<8x128xf32>
    %112 = arith.mulf %110, %111 : vector<8x128xf32>
    %113 = arith.addf %85, %112 : vector<8x128xf32>
    %cst_39 = arith.constant -1.000000e+30 : f32
    %114 = vector.broadcast %cst_39 : f32 to vector<8x128xf32>
    %115 = arith.select %17, %112, %114 : vector<8x128xi1>, vector<8x128xf32>
    %cst_40 = arith.constant dense<0xFF800000> : vector<8xf32>
    %116 = vector.multi_reduction <maximumf>, %115, %cst_40 [1] : vector<8x128xf32> to vector<8xf32>
    %117 = vector.shape_cast %116 : vector<8xf32> to vector<8x1xf32>
    %118 = vector.broadcast %117 : vector<8x1xf32> to vector<8x128xf32>
    %119 = arith.subf %115, %118 : vector<8x128xf32>
    %120 = math.exp %119 : vector<8x128xf32>
    %cst_41 = arith.constant dense<0.000000e+00> : vector<8xf32>
    %121 = vector.multi_reduction <add>, %120, %cst_41 [1] : vector<8x128xf32> to vector<8xf32>
    %122 = vector.shape_cast %121 : vector<8xf32> to vector<8x1xf32>
    %123 = tpu.reciprocal %122 {approx = true} : vector<8x1xf32> -> vector<8x1xf32>
    %124 = vector.broadcast %123 : vector<8x1xf32> to vector<8x128xf32>
    %125 = arith.mulf %120, %124 : vector<8x128xf32>
    %126 = arith.truncf %125 : vector<8x128xf32> to vector<8x128xbf16>
    %cst_42 = arith.constant dense<0.000000e+00> : vector<8x8xf32>
    %127 = tpu.matmul %126, %109, %cst_42 {dimension_numbers = #tpu.dot_dimension_numbers<[1], [0], [0], [1], [0, 0, 1, 1], [], []>} : vector<8x128xbf16>, vector<128x8xbf16>, vector<8x8xf32> -> vector<8x8xf32>
    %128 = arith.truncf %127 : vector<8x8xf32> to vector<8x8xbf16>
    %129 = vector.extract_strided_slice %14 {offsets = [24, 0], sizes = [8, 128], strides = [1, 1]} : vector<128x128xbf16> to vector<8x128xbf16>
    %cst_43 = arith.constant dense<0.000000e+00> : vector<8x128xf32>
    %130 = tpu.matmul %128, %129, %cst_43 {dimension_numbers = #tpu.dot_dimension_numbers<[1], [0], [0], [1], [0, 0, 1, 1], [], []>} : vector<8x8xbf16>, vector<8x128xbf16>, vector<8x128xf32> -> vector<8x128xf32>
    %131 = arith.addf %103, %130 : vector<8x128xf32>
    %c0_44 = arith.constant 0 : index
    %c0_45 = arith.constant 0 : index
    %132 = vector.load %arg8[%c0_44, %c0_45] : memref<1x128xf32, #tpu.memory_space<vmem>>, vector<1x128xf32>
    %133 = vector.broadcast %132 : vector<1x128xf32> to vector<8x128xf32>
    %134 = arith.addf %131, %133 : vector<8x128xf32>
    %c0_46 = arith.constant 0 : index
    %c0_47 = arith.constant 0 : index
    %135 = vector.load %arg9[%c0_46, %c0_47] : memref<128x128xbf16, #tpu.memory_space<vmem>>, vector<128x128xbf16>
    %cst_48 = arith.constant dense<0.000000e+00> : vector<8x128xf32>
    %136 = tpu.matmul %0, %135, %cst_48 {dimension_numbers = #tpu.dot_dimension_numbers<[1], [0], [0], [1], [0, 0, 1, 1], [], []>} : vector<8x128xbf16>, vector<128x128xbf16>, vector<8x128xf32> -> vector<8x128xf32>
    %137 = arith.truncf %134 : vector<8x128xf32> to vector<8x128xbf16>
    %c0_49 = arith.constant 0 : index
    %c0_50 = arith.constant 0 : index
    %138 = vector.load %arg10[%c0_49, %c0_50] : memref<128x128xbf16, #tpu.memory_space<vmem>>, vector<128x128xbf16>
    %cst_51 = arith.constant dense<0.000000e+00> : vector<8x128xf32>
    %139 = tpu.matmul %137, %138, %cst_51 {dimension_numbers = #tpu.dot_dimension_numbers<[1], [0], [0], [1], [0, 0, 1, 1], [], []>} : vector<8x128xbf16>, vector<128x128xbf16>, vector<8x128xf32> -> vector<8x128xf32>
    %140 = arith.addf %136, %139 : vector<8x128xf32>
    %c0_52 = arith.constant 0 : index
    %c0_53 = arith.constant 0 : index
    %141 = vector.load %arg11[%c0_52, %c0_53] : memref<1x128xf32, #tpu.memory_space<vmem>>, vector<1x128xf32>
    %142 = vector.broadcast %141 : vector<1x128xf32> to vector<8x128xf32>
    %143 = arith.addf %140, %142 : vector<8x128xf32>
    %cst_54 = arith.constant 0.000000e+00 : f32
    %144 = vector.broadcast %cst_54 : f32 to vector<8x128xf32>
    %145 = arith.maximumf %143, %144 : vector<8x128xf32>
    %146 = arith.truncf %145 : vector<8x128xf32> to vector<8x128xbf16>
    %c0_55 = arith.constant 0 : index
    %c0_56 = arith.constant 0 : index
    %147 = vector.load %arg12[%c0_55, %c0_56] : memref<128x128xbf16, #tpu.memory_space<vmem>>, vector<128x128xbf16>
    %cst_57 = arith.constant dense<0.000000e+00> : vector<8x128xf32>
    %148 = tpu.matmul %146, %147, %cst_57 {dimension_numbers = #tpu.dot_dimension_numbers<[1], [0], [0], [1], [0, 0, 1, 1], [], []>} : vector<8x128xbf16>, vector<128x128xbf16>, vector<8x128xf32> -> vector<8x128xf32>
    %c0_58 = arith.constant 0 : index
    %c0_59 = arith.constant 0 : index
    %149 = vector.load %arg13[%c0_58, %c0_59] : memref<1x128xf32, #tpu.memory_space<vmem>>, vector<1x128xf32>
    %150 = vector.broadcast %149 : vector<1x128xf32> to vector<8x128xf32>
    %151 = arith.addf %148, %150 : vector<8x128xf32>
    %c0_60 = arith.constant 0 : index
    %c0_61 = arith.constant 0 : index
    %152 = vector.load %arg14[%c0_60, %c0_61] : memref<8x128xf32, #tpu.memory_space<vmem>>, vector<8x128xf32>
    tpu.vector_store %arg14[%c0_60, %c0_61], %151 {strides = array<i32>} : memref<8x128xf32, #tpu.memory_space<vmem>>, vector<8x128xf32>,
    %cst_62 = arith.constant 2.500000e-01 : f32
    %153 = vector.broadcast %cst_62 : f32 to vector<8x128xf32>
    %154 = arith.mulf %113, %153 : vector<8x128xf32>
    %c0_63 = arith.constant 0 : index
    %c0_64 = arith.constant 0 : index
    %155 = vector.load %arg15[%c0_63, %c0_64] : memref<8x128xf32, #tpu.memory_space<vmem>>, vector<8x128xf32>
    tpu.vector_store %arg15[%c0_63, %c0_64], %154 {strides = array<i32>} : memref<8x128xf32, #tpu.memory_space<vmem>>, vector<8x128xf32>,
    return
  }
  func.func @transform_0(%arg0: i32) -> (i32, i32) {
    %c0_i32 = arith.constant 0 : i32
    %c0_i32_0 = arith.constant 0 : i32
    return %arg0, %c0_i32 : i32, i32
  }
  func.func @transform_1(%arg0: i32) -> (i32, i32) {
    %c0_i32 = arith.constant 0 : i32
    %c0_i32_0 = arith.constant 0 : i32
    %c0_i32_1 = arith.constant 0 : i32
    return %c0_i32, %c0_i32_0 : i32, i32
  }
  func.func @transform_2(%arg0: i32) -> (i32, i32) {
    %c0_i32 = arith.constant 0 : i32
    %c0_i32_0 = arith.constant 0 : i32
    %c0_i32_1 = arith.constant 0 : i32
    return %c0_i32, %c0_i32_0 : i32, i32
  }
  func.func @transform_3(%arg0: i32) -> (i32, i32) {
    %c0_i32 = arith.constant 0 : i32
    %c0_i32_0 = arith.constant 0 : i32
    %c0_i32_1 = arith.constant 0 : i32
    return %c0_i32, %c0_i32_0 : i32, i32
  }
  func.func @transform_4(%arg0: i32) -> (i32, i32) {
    %c0_i32 = arith.constant 0 : i32
    %c0_i32_0 = arith.constant 0 : i32
    %c0_i32_1 = arith.constant 0 : i32
    return %c0_i32, %c0_i32_0 : i32, i32
  }
  func.func @transform_5(%arg0: i32) -> (i32, i32) {
    %c0_i32 = arith.constant 0 : i32
    %c0_i32_0 = arith.constant 0 : i32
    %c0_i32_1 = arith.constant 0 : i32
    return %c0_i32, %c0_i32_0 : i32, i32
  }
  func.func @transform_6(%arg0: i32) -> (i32, i32) {
    %c0_i32 = arith.constant 0 : i32
    %c0_i32_0 = arith.constant 0 : i32
    %c0_i32_1 = arith.constant 0 : i32
    return %c0_i32, %c0_i32_0 : i32, i32
  }
  func.func @transform_7(%arg0: i32) -> (i32, i32) {
    %c0_i32 = arith.constant 0 : i32
    %c0_i32_0 = arith.constant 0 : i32
    %c0_i32_1 = arith.constant 0 : i32
    return %c0_i32, %c0_i32_0 : i32, i32
  }
  func.func @transform_8(%arg0: i32) -> (i32, i32) {
    %c0_i32 = arith.constant 0 : i32
    %c0_i32_0 = arith.constant 0 : i32
    %c0_i32_1 = arith.constant 0 : i32
    return %c0_i32, %c0_i32_0 : i32, i32
  }
  func.func @transform_9(%arg0: i32) -> (i32, i32) {
    %c0_i32 = arith.constant 0 : i32
    %c0_i32_0 = arith.constant 0 : i32
    %c0_i32_1 = arith.constant 0 : i32
    return %c0_i32, %c0_i32_0 : i32, i32
  }
  func.func @transform_10(%arg0: i32) -> (i32, i32) {
    %c0_i32 = arith.constant 0 : i32
    %c0_i32_0 = arith.constant 0 : i32
    %c0_i32_1 = arith.constant 0 : i32
    return %c0_i32, %c0_i32_0 : i32, i32
  }
  func.func @transform_11(%arg0: i32) -> (i32, i32) {
    %c0_i32 = arith.constant 0 : i32
    %c0_i32_0 = arith.constant 0 : i32
    %c0_i32_1 = arith.constant 0 : i32
    return %c0_i32, %c0_i32_0 : i32, i32
  }
  func.func @transform_12(%arg0: i32) -> (i32, i32) {
    %c0_i32 = arith.constant 0 : i32
    %c0_i32_0 = arith.constant 0 : i32
    %c0_i32_1 = arith.constant 0 : i32
    return %c0_i32, %c0_i32_0 : i32, i32
  }
  func.func @transform_13(%arg0: i32) -> (i32, i32) {
    %c0_i32 = arith.constant 0 : i32
    %c0_i32_0 = arith.constant 0 : i32
    return %arg0, %c0_i32 : i32, i32
  }
  func.func @transform_14(%arg0: i32) -> (i32, i32) {
    %c0_i32 = arith.constant 0 : i32
    %c0_i32_0 = arith.constant 0 : i32
    return %arg0, %c0_i32 : i32, i32
  }
}

</mosaic_0001>

<bundles_post_ra>
// kernel: tpu_custom_call.1
= control target key start
LH: loop header
LB: loop body
LE: loop exit
PB: predicated region body
PF: predicated region fallthrough
CT: control target
= control target key end

     0   :  { %s4313_s0 = inlined_call_operand.hbm [shape: bf16[16,128], index: 0, kind: input, shape index: {}]   ;;  %s4314_s1 = inlined_call_operand.hbm [shape: bf16[128,128], index: 1, kind: input, shape index: {}]   ;;  %s4315_s2 = inlined_call_operand.hbm [shape: bf16[128,128], index: 2, kind: input, shape index: {}]   ;;  %s4316_s3 = inlined_call_operand.vmem [shape: f32[1,128], index: 3, kind: input, shape index: {}]   ;;  %s4317_s4 = inlined_call_operand.hbm [shape: bf16[128,256], index: 4, kind: input, shape index: {}]   ;;  %s4318_s5 = inlined_call_operand.vmem [shape: f32[1,256], index: 5, kind: input, shape index: {}]   ;;  %s4319_s6 = inlined_call_operand.hbm [shape: bf16[128,128], index: 6, kind: input, shape index: {}]   ;;  %s4320_s7 = inlined_call_operand.vmem [shape: f32[1,128], index: 7, kind: input, shape index: {}]   ;;  %s4321_s8 = inlined_call_operand.hbm [shape: bf16[128,128], index: 8, kind: input, shape index: {}]   ;;  %s4322_s9 = inlined_call_operand.hbm [shape: bf16[128,128], index: 9, kind: input, shape index: {}]   ;;  %s4323_s10 = inlined_call_operand.vmem [shape: f32[1,128], index: 10, kind: input, shape index: {}]   ;;  %s4324_s11 = inlined_call_operand.hbm [shape: bf16[128,128], index: 11, kind: input, shape index: {}]   ;;  %s4325_s12 = inlined_call_operand.vmem [shape: f32[1,128], index: 12, kind: input, shape index: {}]   ;;  %s4326_s13 = inlined_call_operand.hbm [shape: f32[16,128], index: 13, kind: output, shape index: {0}]   ;;  %s4327_s14 = inlined_call_operand.hbm [shape: f32[16,128], index: 14, kind: output, shape index: {1}]  }
   0x1   :  { %4336 = sst [smem:[#allocation26_spill]] %s4313_s0 }
   0x2   :  { %4337 = sst [smem:[#allocation27_spill]] %s4314_s1 }
   0x3   :  { %4338 = sst [smem:[#allocation28_spill]] %s4315_s2 }
   0x4   :  { %4339 = sst [smem:[#allocation29_spill]] %s4316_s3 }
   0x5   :  { %4340 = sst [smem:[#allocation30_spill]] %s4320_s7 }
   0x6   :  { %4341 = sst [smem:[#allocation31_spill]] %s4323_s10 }
   0x7   :  { %4342 = sst [smem:[#allocation32_spill]] %s4325_s12 }
   0x8   :  { %4343 = sst [smem:[#allocation33_spill]] %s4326_s13 }
   0x9   :  { %4344 = sst [smem:[#allocation34_spill]] %s4327_s14 }
   0xa   :  { %20 = vsyncpa [#allocation3], 0 }
   0xb   :  { %22 = vsyncpa [#allocation3 + $0x1], 0 }
   0xc   :  { %23 = vsyncpa [#allocation6], 0 }
   0xd   :  { %24 = vsyncpa [#allocation9], 0 }
   0xe   :  { %25 = vsyncpa [#allocation12], 0 }
   0xf   :  { %26 = vsyncpa [#allocation15], 0 }
  0x10   :  { %27 = vsyncpa [#allocation4], 0 }
  0x11   :  { %29 = vsyncpa [#allocation4 + $0x1], 0 }
  0x12   :  { %30 = vsyncpa [#allocation18], 0 }
  0x13   :  { %32 = vsyncpa [#allocation18 + $0x1], 0  ;;  %s3502_s29 = smov 0   ;;  %s3504_s30 = smov 0  }
  0x14   :  { %s3506_s15 = smov 0   ;;  %s3508_s16 = smov 0  }
  0x15 LB: > { %s3407_s17 = smov [#allocation5]   ;;  %s3523_s19 = sadd.s32 4294967295, %s3405_s16   ;;  %s3405_s16 = sphi %s3508_s16, %s4379_s16   ;;  %s3401_s15 = sphi %s3506_s15, %s4378_s15   ;;  %s3397_s30 = sphi %s3504_s30, %s4377_s30   ;;  %s3393_s29 = sphi %s3502_s29, %s4376_s29  }
  0x16   : > { %s385_s18 = sshll.u32 %s3407_s17, 4  ;;  %p2376_p0 = scmp.ge.s32.totalorder %s3405_s16, 1  ;;  %s3528_s18 = int_to_ptr.vmem [resolvable:$true] %s385_s18 }
  0x17   : > { %p4332_p1 = scmp.eq.s32.totalorder %s3523_s19, 0  ;;  %p373_p2 = scmp.lt.s32.totalorder %s3405_s16, 3 }
  0x18   : > { %s3408_s21 = smov [#allocation8]   ;;  %s3409_s24 = smov [#allocation11]  }
  0x19   : > { %p3530_p3 = pnand %p2376_p0, %p373_p2  ;;  %s414_s22 = sshll.u32 %s3408_s21, 4  ;;  %s3543_s22 = int_to_ptr.vmem [resolvable:$true] %s414_s22 }
  0x1a   : > { %s3545_s25 = sshll.u32 %s3409_s24, 4  ;;  %s4347_s1 = sld [smem:[#allocation27_spill]]  ;;  %s447_s25 = int_to_ptr.vmem [resolvable:$true] %s3545_s25 }
  0x1b   : > { %s4345_s20 = scalar_select %p3530_p3, 1, 0 }
  0x1c   : > { %p2886_p5 = pneg %p3530_p3 }
  0x1e   : > { %p3539_p6 = pnand %p2886_p5, %p4332_p1 }
  0x20   : > { %s3065_s28 = scalar_lea.hbm %s4347_s1, 1024  ;;  %p3555_p8 = pneg %p3539_p6 }
  0x21   : > { %p3066_p7 = scmp.ne.s32.totalorder %s4347_s1, %s3065_s28  ;;  %p3072_p11 = scmp.lt.u32.totalorder %s3065_s28, %s4347_s1 }
  0x23   : > { %p3068_p9 = pnand %p3555_p8, %p3066_p7 }
  0x25   : > { %p3069_p10 = pneg %p3068_p9 }
  0x27   : > { %p3074_p12 = pnand %p3072_p11, %p3069_p10 }
  0x29   : > { %3077 = shalt.err (!%p3074_p12)
}
  0x2a   : > { %s3078_s13 = scalar_lea.vmem %s3528_s18, 1024  ;;  %p3086_p5 = scmp.lt.s32.totalorder %s3528_s18, %s3528_s18 }
  0x2b   : > { %p3079_p13 = scmp.ne.s32.totalorder %s3528_s18, %s3078_s13  ;;  %p3087_p4 = scmp.lt.s32.totalorder %s3078_s13, %s3078_s13 }
  0x2d   : > { %p3081_p0 = pnand %p3079_p13, %p3555_p8  ;;  %p3088_p7 = por %p3087_p4, %p3086_p5 }
  0x2f   : > { %p3082_p2 = pneg %p3081_p0 }
  0x31   : > { %p3089_p9 = pnand %p3088_p7, %p3082_p2 }
  0x33   : > { %3092 = shalt.err (!%p3089_p9)
}
  0x34   : > { %s4330_s26 = smov 64   ;;  %s3411_s12 = smov 4  }
  0x35   : > { %2889 = dma.hbm_to_vmem [thread:$0]  (!%p3539_p6), %s4347_s1, 1024, %s3528_s18, [#allocation6], %s4330_s26, %s4330_s26, %s3411_s12  }
  0x36   : > { %s3093_s13 = scalar_lea.hbm %s4317_s4, 2048 }
  0x37   : > { %p3094_p4 = scmp.ne.s32.totalorder %s4317_s4, %s3093_s13  ;;  %p3100_p12 = scmp.lt.u32.totalorder %s3093_s13, %s4317_s4 }
  0x39   : > { %p3096_p10 = pnand %p3094_p4, %p3555_p8 }
  0x3b   : > { %p3097_p11 = pneg %p3096_p10 }
  0x3d   : > { %p3102_p13 = pnand %p3100_p12, %p3097_p11 }
  0x3f   : > { %3105 = shalt.err (!%p3102_p13)
}
  0x40   : > { %s3106_s18 = scalar_lea.vmem %s3543_s22, 2048  ;;  %p3114_p7 = scmp.lt.s32.totalorder %s3543_s22, %s3543_s22 }
  0x41   : > { %p3107_p0 = scmp.ne.s32.totalorder %s3543_s22, %s3106_s18  ;;  %p3115_p9 = scmp.lt.s32.totalorder %s3106_s18, %s3106_s18 }
  0x43   : > { %p3109_p2 = pnand %p3107_p0, %p3555_p8  ;;  %p3116_p4 = por %p3115_p9, %p3114_p7 }
  0x45   : > { %p3110_p5 = pneg %p3109_p2 }
  0x47   : > { %p3117_p10 = pnand %p3116_p4, %p3110_p5 }
  0x49   : > { %3120 = shalt.err (!%p3117_p10)
}
  0x4a   : > { %s3412_s10 = smov 128   ;;  %s3413_s3 = smov 8  }
  0x4b   : > { %2895 = dma.hbm_to_vmem [thread:$0]  (!%p3539_p6), %s4317_s4, 2048, %s3543_s22, [#allocation9], %s3412_s10, %s3412_s10, %s3413_s3  }
  0x4c   : > { %s3121_s17 = scalar_lea.hbm %s4321_s8, 1024 }
  0x4d   : > { %p3122_p11 = scmp.ne.s32.totalorder %s4321_s8, %s3121_s17  ;;  %p3128_p0 = scmp.lt.u32.totalorder %s3121_s17, %s4321_s8 }
  0x4f   : > { %p3124_p12 = pnand %p3122_p11, %p3555_p8 }
  0x51   : > { %p3125_p13 = pneg %p3124_p12 }
  0x53   : > { %p3130_p2 = pnand %p3128_p0, %p3125_p13 }
  0x55   : > { %3133 = shalt.err (!%p3130_p2)
}
  0x56   : > { %s3134_s7 = scalar_lea.vmem %s447_s25, 1024  ;;  %p3142_p4 = scmp.lt.s32.totalorder %s447_s25, %s447_s25 }
  0x57   : > { %p3135_p5 = scmp.ne.s32.totalorder %s447_s25, %s3134_s7  ;;  %p3143_p10 = scmp.lt.s32.totalorder %s3134_s7, %s3134_s7 }
  0x59   : > { %p3137_p7 = pnand %p3135_p5, %p3555_p8  ;;  %p3144_p1 = por %p3143_p10, %p3142_p4 }
  0x5b   : > { %p3138_p9 = pneg %p3137_p7 }
  0x5d   : > { %p3145_p3 = pnand %p3144_p1, %p3138_p9 }
  0x5f   : > { %3148 = shalt.err (!%p3145_p3)
}
  0x60   : > { %s4349_s22 = smov 64   ;;  %s3414_s3 = smov [#allocation7]  }
  0x61   : > { %2901 = dma.hbm_to_vmem [thread:$0]  (!%p3539_p6), %s4321_s8, 1024, %s447_s25, [#allocation12], %s4349_s22, %s4349_s22, %s3411_s12  }
  0x62   : > { %s398_s14 = sshll.u32 %s3414_s3, 4  ;;  %s3415_s27 = smov [#allocation10]   ;;  %s399_s14 = int_to_ptr.vmem [resolvable:$true] %s398_s14 }
  0x63   : > { %s430_s28 = sshll.u32 %s3415_s27, 4  ;;  %s4350_s2 = sld [smem:[#allocation28_spill]]  ;;  %s431_s28 = int_to_ptr.vmem [resolvable:$true] %s430_s28 }
  0x69   : > { %s3149_s13 = scalar_lea.hbm %s4350_s2, 1024 }
  0x6a   : > { %p3150_p1 = scmp.ne.s32.totalorder %s4350_s2, %s3149_s13  ;;  %p3156_p12 = scmp.lt.u32.totalorder %s3149_s13, %s4350_s2 }
  0x6c   : > { %p3152_p3 = pnand %p3150_p1, %p3555_p8 }
  0x6e   : > { %p3153_p11 = pneg %p3152_p3 }
  0x70   : > { %p3158_p13 = pnand %p3156_p12, %p3153_p11 }
  0x72   : > { %3161 = shalt.err (!%p3158_p13)
}
  0x73   : > { %s3162_s25 = scalar_lea.vmem %s399_s14, 1024  ;;  %p3170_p7 = scmp.lt.s32.totalorder %s399_s14, %s399_s14 }
  0x74   : > { %p3163_p0 = scmp.ne.s32.totalorder %s399_s14, %s3162_s25  ;;  %p3171_p9 = scmp.lt.s32.totalorder %s3162_s25, %s3162_s25 }
  0x76   : > { %p3165_p2 = pnand %p3163_p0, %p3555_p8  ;;  %p3172_p4 = por %p3171_p9, %p3170_p7 }
  0x78   : > { %p3166_p5 = pneg %p3165_p2 }
  0x7a   : > { %p3173_p10 = pnand %p3172_p4, %p3166_p5 }
  0x7c   : > { %3176 = shalt.err (!%p3173_p10)
}
  0x7d   : > { %2892 = dma.hbm_to_vmem [thread:$0]  (!%p3539_p6), %s4350_s2, 1024, %s399_s14, [#allocation6], %s4349_s22, %s4349_s22, %s3411_s12  }
  0x7e   : > { %s3177_s17 = scalar_lea.hbm %s4319_s6, 1024 }
  0x7f   : > { %p3178_p1 = scmp.ne.s32.totalorder %s4319_s6, %s3177_s17  ;;  %p3184_p12 = scmp.lt.u32.totalorder %s3177_s17, %s4319_s6 }
  0x81   : > { %p3180_p3 = pnand %p3178_p1, %p3555_p8 }
  0x83   : > { %p3181_p11 = pneg %p3180_p3 }
  0x85   : > { %p3186_p13 = pnand %p3184_p12, %p3181_p11 }
  0x87   : > { %3189 = shalt.err (!%p3186_p13)
}
  0x88   : > { %s3190_s26 = scalar_lea.vmem %s431_s28, 1024  ;;  %p3198_p7 = scmp.lt.s32.totalorder %s431_s28, %s431_s28 }
  0x89   : > { %p3191_p0 = scmp.ne.s32.totalorder %s431_s28, %s3190_s26  ;;  %p3199_p9 = scmp.lt.s32.totalorder %s3190_s26, %s3190_s26 }
  0x8b   : > { %p3193_p2 = pnand %p3191_p0, %p3555_p8  ;;  %p3200_p4 = por %p3199_p9, %p3198_p7 }
  0x8d   : > { %p3194_p5 = pneg %p3193_p2 }
  0x8f   : > { %p3201_p10 = pnand %p3200_p4, %p3194_p5 }
  0x91   : > { %3204 = shalt.err (!%p3201_p10)
}
  0x92   : > { %2898 = dma.hbm_to_vmem [thread:$0]  (!%p3539_p6), %s4319_s6, 1024, %s431_s28, [#allocation9], %s4349_s22, %s4349_s22, %s3411_s12  }
  0x93   : > { %s3416_s1 = smov [#allocation13]   ;;  %s3417_s3 = smov [#allocation14]  }
  0x94   : > { %s459_s10 = sshll.u32 %s3416_s1, 4  ;;  %s475_s27 = sshll.u32 %s3417_s3, 4  ;;  %s460_s10 = int_to_ptr.vmem [resolvable:$true] %s459_s10  ;;  %s476_s27 = int_to_ptr.vmem [resolvable:$true] %s475_s27 }
  0x95   : > { %s3205_s13 = scalar_lea.hbm %s4322_s9, 1024 }
  0x96   : > { %p3206_p1 = scmp.ne.s32.totalorder %s4322_s9, %s3205_s13  ;;  %p3212_p12 = scmp.lt.u32.totalorder %s3205_s13, %s4322_s9 }
  0x98   : > { %p3208_p3 = pnand %p3206_p1, %p3555_p8 }
  0x9a   : > { %p3209_p11 = pneg %p3208_p3 }
  0x9c   : > { %p3214_p13 = pnand %p3212_p12, %p3209_p11 }
  0x9e   : > { %3217 = shalt.err (!%p3214_p13)
}
  0x9f   : > { %s3218_s28 = scalar_lea.vmem %s460_s10, 1024  ;;  %p3226_p7 = scmp.lt.s32.totalorder %s460_s10, %s460_s10 }
  0xa0   : > { %p3219_p0 = scmp.ne.s32.totalorder %s460_s10, %s3218_s28  ;;  %p3227_p9 = scmp.lt.s32.totalorder %s3218_s28, %s3218_s28 }
  0xa2   : > { %p3221_p2 = pnand %p3219_p0, %p3555_p8  ;;  %p3228_p4 = por %p3227_p9, %p3226_p7 }
  0xa4   : > { %p3222_p5 = pneg %p3221_p2 }
  0xa6   : > { %p3229_p10 = pnand %p3228_p4, %p3222_p5 }
  0xa8   : > { %3232 = shalt.err (!%p3229_p10)
}
  0xa9   : > { %2904 = dma.hbm_to_vmem [thread:$0]  (!%p3539_p6), %s4322_s9, 1024, %s460_s10, [#allocation12], %s4349_s22, %s4349_s22, %s3411_s12  }
  0xaa   : > { %s3233_s24 = scalar_lea.hbm %s4324_s11, 1024 }
  0xab   : > { %p3234_p1 = scmp.ne.s32.totalorder %s4324_s11, %s3233_s24  ;;  %p3240_p12 = scmp.lt.u32.totalorder %s3233_s24, %s4324_s11 }
  0xad   : > { %p3236_p3 = pnand %p3234_p1, %p3555_p8 }
  0xaf   : > { %p3237_p11 = pneg %p3236_p3 }
  0xb1   : > { %p3242_p13 = pnand %p3240_p12, %p3237_p11 }
  0xb3   : > { %3245 = shalt.err (!%p3242_p13)
}
  0xb4   : > { %s3246_s14 = scalar_lea.vmem %s476_s27, 1024  ;;  %p3254_p7 = scmp.lt.s32.totalorder %s476_s27, %s476_s27 }
  0xb5   : > { %p3247_p0 = scmp.ne.s32.totalorder %s476_s27, %s3246_s14  ;;  %p3255_p9 = scmp.lt.s32.totalorder %s3246_s14, %s3246_s14 }
  0xb7   : > { %p3249_p2 = pnand %p3247_p0, %p3555_p8  ;;  %p3256_p4 = por %p3255_p9, %p3254_p7 }
  0xb9   : > { %p3250_p5 = pneg %p3249_p2 }
  0xbb   : > { %p3257_p10 = pnand %p3256_p4, %p3250_p5 }
  0xbd   : > { %3260 = shalt.err (!%p3257_p10)
}
  0xbe   : > { %2907 = dma.hbm_to_vmem [thread:$0]  (!%p3539_p6), %s4324_s11, 1024, %s476_s27, [#allocation15], %s4349_s22, %s4349_s22, %s3411_s12  }
  0xbf   : > { %s2375_s23 = sadd.s32 4294967294, %s3405_s16   ;;  %s3710_s21 = sadd.s32 1, %s3405_s16  }
  0xc0   : > { %s45_s25 = sadd.s32 1, %s3401_s15  ;;  %s42_s1 = ssub.s32 %s3405_s16, %s3710_s21 }
  0xc1   : > { %p52_p8 = scmp.ne.s32.totalorder %s3401_s15, %s3397_s30  ;;  %p43_p1 = scmp.eq.s32.totalorder %s42_s1, 0 }
  0xc2   : > { %p53_p3 = scmp.eq.s32.totalorder %s3405_s16, 0  ;;  %p58_p11 = scmp.ne.s32.totalorder %s3397_s30, %s3393_s29 }
  0xc3   : > { %p334_p12 = scmp.eq.s32.totalorder %s3523_s19, 1  ;;  %p4351_p0 = scmp.eq.s32.totalorder %s3523_s19, 0 }
  0xc4   : > { %s3722_s3 = scalar_select %p43_p1, %s3401_s15, %s45_s25  }
  0xc5   : > { %p54_p13 = por %p53_p3, %p52_p8  ;;  %p3726_p2 = por %p4351_p0, %p58_p11 }
  0xc6   : > { %p3730_p6 = por %p334_p12, %p52_p8  ;;  %p340_p5 = scmp.eq.s32.totalorder %s2375_s23, 1 }
  0xc7   : > { %p2926_p7 = scmp.lt.s32.totalorder %s3405_s16, 2  ;;  %s492_s22 = sand.u32 1, %s3401_s15  }
  0xc8   : > { %s4353_s12 = scalar_select %p3730_p6, 1, 0 }
  0xc9   : > { %p3736_p9 = por %p340_p5, %p58_p11  ;;  %s2385_s24 = sshll.u32 %s492_s22, 2 }
  0xca   : > { %s2386_s13 = sshll.u32 %s3405_s16, 6  ;;  %s4355_s0 = sld [smem:[#allocation26_spill]] }
  0xcb   : > { %s4354_s27 = scalar_select %p3736_p9, 1, 0 }
  0xcc   : > { %s496_s14 = scalar_lea.vmem [#allocation2], %s2385_s24  ;;  %p3746_p4 = pnand %p2926_p7, %p54_p13 }
  0xcd   : > { %s503_s10 = sshll.u32 %s496_s14, 4  ;;  %s493_s23 = scalar_lea.sflag [#allocation3], %s492_s22  ;;  %s3750_s10 = int_to_ptr.vmem [resolvable:$true] %s503_s10 }
  0xce   : > { %p3263_p8 = pneg %p3746_p4 }
  0xd0   : > { %s3744_s26 = scalar_lea.hbm %s4355_s0, %s2386_s13  ;;  %s3266_s13 = scalar_lea.hbm %s4355_s0, 128 }
  0xd1   : > { %s3261_s25 = scalar_lea.hbm %s3744_s26, 64  ;;  %p3267_p11 = scmp.lt.u32.totalorder %s3744_s26, %s4355_s0 }
  0xd2   : > { %p3262_p10 = scmp.ne.s32.totalorder %s3744_s26, %s3261_s25  ;;  %p3268_p12 = scmp.lt.u32.totalorder %s3266_s13, %s3261_s25 }
  0xd3   : > { %p3270_p0 = scmp.lt.u32.totalorder %s3261_s25, %s3744_s26 }
  0xd4   : > { %p3264_p1 = pnand %p3263_p8, %p3262_p10  ;;  %p3269_p13 = por %p3268_p12, %p3267_p11 }
  0xd6   : > { %p3265_p3 = pneg %p3264_p1  ;;  %p3271_p5 = por %p3270_p0, %p3269_p13 }
  0xd8   : > { %p3272_p7 = pnand %p3271_p5, %p3265_p3 }
  0xda   : > { %3275 = shalt.err (!%p3272_p7)
}
  0xdb   : > { %s3276_s22 = scalar_lea.vmem %s3750_s10, 64  ;;  %s3418_s14 = smov [#allocation2]  }
  0xdc   : > { %p3277_p10 = scmp.ne.s32.totalorder %s3750_s10, %s3276_s22  ;;  %s3281_s1 = sshll.u32 %s3418_s14, 4  ;;  %s3282_s1 = int_to_ptr.vmem [resolvable:$false] %s3281_s1 }
  0xdd   : > { %s3283_s24 = scalar_lea.vmem %s3282_s1, 128  ;;  %p3284_p6 = scmp.lt.s32.totalorder %s3750_s10, %s3282_s1 }
  0xde   : > { %p3279_p1 = pnand %p3277_p10, %p3263_p8  ;;  %p3285_p11 = scmp.lt.s32.totalorder %s3283_s24, %s3276_s22 }
  0xe0   : > { %p3280_p9 = pneg %p3279_p1  ;;  %p3286_p12 = por %p3285_p11, %p3284_p6 }
  0xe2   : > { %p3287_p13 = pnand %p3286_p12, %p3280_p9 }
  0xe4   : > { %3290 = shalt.err (!%p3287_p13)
}
  0xe5   : > { %2911 = dma.hbm_to_vmem [thread:$0]  (!%p3746_p4), %s3744_s26, 64, %s3750_s10, %s493_s23  }
  0xe6   : > { %p4357_p3 = scmp.ne.s32.totalorder %s4345_s20, 0 }
  0xe7   : > { %s3780_s25 = sand.u32 (!%p4357_p3), 1, %s3397_s30  }
  0xe8   : > { %512 = sbr.rel (%p4357_p3) target bundleno = 3591 (0xe07), region = 72  ;;  %s2388_s13 = sshll.u32 (!%p4357_p3), %s3780_s25, 2 }
  0xe9   : > { %s515_s18 = scalar_lea.sflag (!%p4357_p3), [#allocation3], %s3780_s25  ;;  %s3784_s7 = scalar_lea.vmem (!%p4357_p3), [#allocation2], %s2388_s13 }
  0xef   : > { %3364 = dma.done.wait (%p3726_p2), %s515_s18, 64  }
  0xf0   : > { %3366 = vsyncadd (%p3726_p2), %s515_s18, 4294967232  ;;  %p4358_p6 = scmp.eq.s32.totalorder %s3523_s19, 0 }
  0xf2   : > { %3368 = dma.done.wait (%p4358_p6), [#allocation6], 2048   ;;  %p4359_p9 = pmov %p4358_p6 }
  0xf3   : > { %p4360_p4 = pmov %p4358_p6 }
  0xf4   : > { %3370 = vsyncadd (%p4359_p9), [#allocation6], 4294965248 }
  0xf5   : > { %3372 = dma.done.wait (%p4360_p4), [#allocation9], 3072   ;;  %p4361_p8 = pmov %p4360_p4 }
  0xf6   : > { %p4362_p0 = pmov %p4360_p4 }
  0xf7   : > { %3374 = vsyncadd (%p4361_p8), [#allocation9], 4294964224 }
  0xf8   : > { %3376 = dma.done.wait (%p4362_p0), [#allocation12], 2048   ;;  %p4363_p5 = pmov %p4362_p0 }
  0xf9   : > { %p4364_p2 = pmov %p4362_p0 }
  0xfa   : > { %3378 = vsyncadd (%p4363_p5), [#allocation12], 4294965248 }
  0xfb   : > { %3380 = dma.done.wait (%p4364_p2), [#allocation15], 1024   ;;  %p4365_p7 = pmov %p4362_p0 }
  0xfc   : > { %v3419_v0 = vmov 0   ;;  %v3420_v1 = vmov 0.0   ;;  %vm3421_vm0 = vmmov 0   ;;  %v2984_v2 = vld [vmem:[#allocation8 + $0x4] ss:$8 sps:$4 sm:$0xff]   ;;  %v3015_v17 = vld [vmem:[#allocation7 + $0x10] sm:$0xff]   ;;  %v743_v35 = vlaneseq }
  0xfd   : > { %3382 = vsyncadd (%p4365_p7), [#allocation15], 4294966272  ;;  %913 = vmatprep.mubr.bf16.mxu1 %v3419_v0  ;;  %2588 = vmatprep.subr.bf16.mxu0 %v3420_v1  ;;  %v2986_v3 = vld [vmem:[#allocation8] ss:$8 sps:$4 sm:$0xff]   ;;  %v2987_v4 = vld [vmem:[#allocation8 + $0x14] ss:$8 sps:$4 sm:$0xff]  }
  0xfe   : > { %2604 = vmatprep.mubr.msk.bf16.mxu0 %vm3421_vm0, %v3420_v1  ;;  %881 = vmatprep.subr.bf16.mxu1 %v2984_v2  ;;  %v2989_v5 = vld [vmem:[#allocation8 + $0x10] ss:$8 sps:$4 sm:$0xff]   ;;  %v2990_v6 = vld [vmem:[#allocation8 + $0x24] ss:$8 sps:$4 sm:$0xff]   ;;  %v2992_v7 = vld [vmem:[#allocation8 + $0x20] ss:$8 sps:$4 sm:$0xff]  }
  0xff   : > { %882 = vmatpush1.bf16.msra.mxu1 %v2986_v3  ;;  %v2993_v8 = vld [vmem:[#allocation8 + $0x34] ss:$8 sps:$4 sm:$0xff]   ;;  %v2995_v9 = vld [vmem:[#allocation8 + $0x30] ss:$8 sps:$4 sm:$0xff]   ;;  %v2996_v10 = vld [vmem:[#allocation8 + $0x44] ss:$8 sps:$4 sm:$0xff]  }
 0x100   : > { %883 = vmatprep.subr.bf16.mxu1 %v2987_v4  ;;  %v2998_v11 = vld [vmem:[#allocation8 + $0x40] ss:$8 sps:$4 sm:$0xff]   ;;  %v2999_v13 = vld [vmem:[#allocation8 + $0x54] ss:$8 sps:$4 sm:$0xff]   ;;  %v3001_v15 = vld [vmem:[#allocation8 + $0x50] ss:$8 sps:$4 sm:$0xff]  }
 0x101   : > { %v3012_v12 = vld [vmem:[#allocation7] sm:$0xff]   ;;  %v3014_v14 = vld [vmem:[#allocation7 + $0x8] sm:$0xff]   ;;  %v3005_v19 = vld [vmem:[#allocation8 + $0x74] ss:$8 sps:$4 sm:$0xff]   ;;  %v744_v36 = vshrl.u32 %v743_v35, 7  ;;  %vm1018_vm1 = vcmask 64512  }
 0x102   : > { %2589 = vmatpush3.bf16.msra.mxu0 %v3012_v12  ;;  %v3002_v16 = vld [vmem:[#allocation8 + $0x64] ss:$8 sps:$4 sm:$0xff]   ;;  %v3004_v18 = vld [vmem:[#allocation8 + $0x60] ss:$8 sps:$4 sm:$0xff]   ;;  %v3017_v20 = vld [vmem:[#allocation7 + $0x18] sm:$0xff]   ;;  %s3422_s26 = smov 120  }
 0x103   : > { %884 = vmatpush1.bf16.msra.mxu1 %v2989_v5  ;;  %2590 = vmatprep.subr.bf16.mxu0 %v3420_v1  ;;  %v3007_v21 = vld [vmem:[#allocation8 + $0x70] ss:$8 sps:$4 sm:$0xff]   ;;  %v3018_v22 = vld [vmem:[#allocation7 + $0x20] sm:$0xff]   ;;  %v3020_v24 = vld [vmem:[#allocation7 + $0x28] sm:$0xff]   ;;  %v745_v37 = vsub.s32 0, %v744_v36  ;;  %v749_v39 = vsub.s32 1, %v744_v36 }
 0x104   : > { %885 = vmatprep.subr.bf16.mxu1 %v2990_v6  ;;  %v3008_v23 = vld [vmem:[#allocation5] sm:$0xff]   ;;  %v3021_v25 = vld [vmem:[#allocation7 + $0x30] sm:$0xff]   ;;  %v3009_v26 = vld [vmem:[#allocation5 + $0x8] sm:$0xff]   ;;  %s4366_s23 = sld [smem:[#allocation29_spill]]  ;;  %s3423_s22 = smov 112   ;;  %vm1323_vm3 = vcmask 1043456  }
 0x105   : > { %v3023_v27 = vld [vmem:[#allocation7 + $0x38] sm:$0xff]   ;;  %v3010_v29 = vld [vmem:[#allocation5 + $0x10] sm:$0xff]   ;;  %v3013_v31 = vld [vmem:[#allocation5 + $0x20] sm:$0xff]   ;;  %s3424_s14 = smov 104   ;;  %s2396_s1 = sshll.u32 %s3780_s25, 3 }
 0x106   : > { %2591 = vmatpush3.bf16.msra.mxu0 %v3014_v14  ;;  %v597_v28 = vld [vmem:[%s3784_s7] sm:$0xf]  ;;  %v3016_v32 = vld [vmem:[#allocation5 + $0x28] sm:$0xff]   ;;  %v3019_v33 = vld [vmem:[#allocation5 + $0x30] sm:$0xff]   ;;  %s4173_s24 = scalar_lea.vmem [#allocation17], %s2396_s1  ;;  %s4367_s20 = sld [smem:[#allocation30_spill]] }
 0x107   : > { %886 = vmatpush1.bf16.msra.mxu1 %v2992_v7  ;;  %2592 = vmatprep.subr.bf16.mxu0 %v3420_v1  ;;  %v3011_v30 = vld [vmem:[#allocation5 + $0x18] sm:$0xff]   ;;  %s4335_s10 = sshll.u32 %s3523_s19, 7  ;;  %s2206_s13 = sshll.u32 %s4173_s24, 4  ;;  %s2207_s13 = int_to_ptr.vmem [resolvable:$true] %s2206_s13 }
 0x108   : > { %887 = vmatprep.subr.bf16.mxu1 %v2993_v8  ;;  %v3022_v34 = vld [vmem:[#allocation5 + $0x38] sm:$0xff]   ;;  %s2180_s18 = scalar_lea.sflag [#allocation18], %s3780_s25  ;;  %p4370_p1 = scmp.ne.s32.totalorder %s4353_s12, 0 }
 0x109   : > { %v741_v38 = vld [vmem:[%s4318_s5] sm:$0x3] }
 0x10a   : > { %2593 = vmatpush3.bf16.msra.mxu0 %v3015_v17  ;;  %v3835_v40 = vrot.slane %v741_v38, %v745_v37  ;;  %v3837_v42 = vrot.slane %v741_v38, %v749_v39 }
 0x10b   : > { %888 = vmatpush1.bf16.msra.mxu1 %v2995_v9  ;;  %2594 = vmatprep.subr.bf16.mxu0 %v3420_v1 }
 0x10c   : > { %889 = vmatprep.subr.bf16.mxu1 %v2996_v10 }
 0x10e   : > { %2595 = vmatpush3.bf16.msra.mxu0 %v3017_v20 }
 0x10f   : > { %890 = vmatpush1.bf16.msra.mxu1 %v2998_v11  ;;  %2596 = vmatprep.subr.bf16.mxu0 %v3420_v1 }
 0x110   : > { %891 = vmatprep.subr.bf16.mxu1 %v2999_v13 }
 0x112   : > { %2597 = vmatpush3.bf16.msra.mxu0 %v3018_v22 }
 0x113   : > { %892 = vmatpush1.bf16.msra.mxu1 %v3001_v15  ;;  %2598 = vmatprep.subr.bf16.mxu0 %v3420_v1 }
 0x114   : > { %893 = vmatprep.subr.bf16.mxu1 %v3002_v16 }
 0x116   : > { %2599 = vmatpush3.bf16.msra.mxu0 %v3020_v24 }
 0x117   : > { %894 = vmatpush1.bf16.msra.mxu1 %v3004_v18  ;;  %2600 = vmatprep.subr.bf16.mxu0 %v3420_v1 }
 0x118   : > { %895 = vmatprep.subr.bf16.mxu1 %v3005_v19 }
 0x11a   : > { %2601 = vmatpush3.bf16.msra.mxu0 %v3021_v25 }
 0x11b   : > { %896 = vmatpush1.bf16.msra.mxu1 %v3007_v21  ;;  %2602 = vmatprep.subr.bf16.mxu0 %v3420_v1 }
 0x11c   : > { %2628 = vmatprep.subr.bf16.mxu1 %v3420_v1 }
 0x11e   : > { %914 = vmatmul.mubr.bf16.vlgmr.msra.gmra.mrb[0].mxu1 %v3008_v23  ;;  %2603 = vmatpush3.bf16.msra.mxu0 %v3023_v27 }
 0x11f   : > { %923 = vmatprep.mubr.bf16.mxu1 %v3419_v0  ;;  %2608 = vmatprep.subr.bf16.mxu0 %v3420_v1 }
 0x121   : > { %2605 = vmatmul.mubr.bf16.vlgmr.msra.gmra.mrb[0].mxu0 %v597_v28 }
 0x122   : > { %2624 = vmatprep.mubr.msk.bf16.mxu0 %vm3421_vm0, %v3420_v1 }
 0x126   : > { %924 = vmatmul.mubr.bf16.gmra.mrb[4].mxu1 %v3009_v26 }
 0x127   : > { %933 = vmatprep.mubr.bf16.mxu1 %v3419_v0 }
 0x12e   : > { %934 = vmatmul.mubr.bf16.gmra.mrb[8].mxu1 %v3010_v29 }
 0x12f   : > { %943 = vmatprep.mubr.bf16.mxu1 %v3419_v0 }
 0x136   : > { %944 = vmatmul.mubr.bf16.gmra.mrb[12].mxu1 %v3011_v30 }
 0x137   : > { %953 = vmatprep.mubr.bf16.mxu1 %v3419_v0 }
 0x13e   : > { %954 = vmatmul.mubr.bf16.gmra.mrb[16].mxu1 %v3013_v31 }
 0x13f   : > { %963 = vmatprep.mubr.bf16.mxu1 %v3419_v0 }
 0x146   : > { %964 = vmatmul.mubr.bf16.gmra.mrb[20].mxu1 %v3016_v32 }
 0x147   : > { %973 = vmatprep.mubr.bf16.mxu1 %v3419_v0 }
 0x14e   : > { %974 = vmatmul.mubr.bf16.gmra.mrb[24].mxu1 %v3019_v33 }
 0x14f   : > { %983 = vmatprep.mubr.bf16.mxu1 %v3419_v0 }
 0x156   : > { %984 = vmatmul.mubr.bf16.gmra.mrb[28].mxu1 %v3022_v34 }
 0x157   : > { %2644 = vmatprep.mubr.msk.bf16.mxu1 %vm3421_vm0, %v3420_v1 }
 0x1f1   : > { %v915_v41 = vpop.f32.mrb[0].mxu1 }
 0x1f2   : > { %v917_v43 = vpop.f32.mrb[1].mxu1  ;;  %v916_v45 = vadd.f32 %v915_v41, %v3835_v40 }
 0x1f3   : > { %v919_v44 = vpop.f32.mrb[2].mxu1  ;;  %v918_v48 = vadd.f32 %v917_v43, %v3837_v42 }
 0x1f4   : > { %v920_v46 = vadd.f32 %v919_v44, %v3835_v40  ;;  %v921_v47 = vpop.f32.mrb[3].mxu1  ;;  %v3862_v63 = vpop.f32.mrb[0].mxu0 }
 0x1f5   : > { %v922_v49 = vadd.f32 %v921_v47, %v3837_v42  ;;  %v2606_v2 = vpop.f32.mrb[1].mxu0 }
 0x1f6   : > { %v3843_v50 = vpack.c.bf16 %v920_v46, %v916_v45  ;;  %v722_v4 = vpop.f32.mrb[2].mxu0 }
 0x1f7   : > { %v3845_v51 = vpack.c.bf16 %v922_v49, %v918_v48  ;;  %v2607_v6 = vpop.f32.mrb[3].mxu0 }
 0x1f8   : > { %1151 = vrot.lane.b32.xlu0 %v3843_v50, %s3422_s26  ;;  %v1023_v52 = vsel %vm1018_vm1, %v3843_v50, 0 }
 0x1f9   : > { %v925_v53 = vpop.f32.mrb[4].mxu1  ;;  %2609 = vmatpush3.bf16.xpose.msra.mxu0 %v1023_v52  ;;  %2629 = vmatpush3.bf16.msra.mxu1 %v3845_v51 }
 0x1fa   : > { %v927_v54 = vpop.f32.mrb[5].mxu1  ;;  %2630 = vmatprep.subr.bf16.mxu1 %v3420_v1  ;;  %2610 = vmatprep.subr.bf16.mxu0 %v3420_v1  ;;  %v926_v56 = vadd.f32 %v925_v53, %v3835_v40 }
 0x1fb   : > { %v929_v55 = vpop.f32.mrb[6].mxu1  ;;  %v928_v59 = vadd.f32 %v927_v54, %v3837_v42 }
 0x1fc   : > { %v930_v57 = vadd.f32 %v929_v55, %v3835_v40  ;;  %v931_v58 = vpop.f32.mrb[7].mxu1  ;;  %v2398_v55 = vld [vmem:[%s4366_s23] ss:$0 sm:$0xff] }
 0x1fd   : > { %v932_v60 = vadd.f32 %v931_v58, %v3837_v42 }
 0x1fe   : > { %v3858_v61 = vpack.c.bf16 %v930_v57, %v926_v56 }
 0x1ff   : > { %v3860_v62 = vpack.c.bf16 %v932_v60, %v928_v59 }
 0x200   : > { %1153 = vrot.lane.b32.xlu0 %v3858_v61, %s3422_s26  ;;  %v1026_v0 = vsel %vm1018_vm1, %v3858_v61, 0 }
 0x201   : > { %v935_v3 = vpop.f32.mrb[8].mxu1  ;;  %2611 = vmatpush3.bf16.xpose.msra.mxu0 %v1026_v0  ;;  %2631 = vmatpush3.bf16.msra.mxu1 %v3860_v62  ;;  %v720_v0 = vadd.f32 %v2398_v55, %v3862_v63 }
 0x202   : > { %v937_v5 = vpop.f32.mrb[9].mxu1  ;;  %2612 = vmatprep.subr.bf16.mxu0 %v3420_v1  ;;  %2632 = vmatprep.subr.bf16.mxu1 %v3420_v1  ;;  %v936_v8 = vadd.f32 %v935_v3, %v3835_v40 }
 0x203   : > { %v939_v7 = vpop.f32.mrb[10].mxu1  ;;  %v938_v11 = vadd.f32 %v937_v5, %v3837_v42 }
 0x204   : > { %v940_v9 = vadd.f32 %v939_v7, %v3835_v40  ;;  %v941_v10 = vpop.f32.mrb[11].mxu1  ;;  %v3947_v7 = vpack.c.bf16 %v720_v0, %v720_v0 }
 0x205   : > { %v942_v12 = vadd.f32 %v941_v10, %v3837_v42 }
 0x206   : > { %v3875_v13 = vpack.c.bf16 %v940_v9, %v936_v8 }
 0x207   : > { %v3877_v14 = vpack.c.bf16 %v942_v12, %v938_v11 }
 0x208   : > { %1155 = vrot.lane.b32.xlu1 %v3875_v13, %s3422_s26  ;;  %v1029_v15 = vsel %vm1018_vm1, %v3875_v13, 0 }
 0x209   : > { %v945_v16 = vpop.f32.mrb[12].mxu1  ;;  %2613 = vmatpush3.bf16.xpose.msra.mxu0 %v1029_v15  ;;  %2633 = vmatpush3.bf16.msra.mxu1 %v3877_v14 }
 0x20a   : > { %v947_v17 = vpop.f32.mrb[13].mxu1  ;;  %2614 = vmatprep.subr.bf16.mxu0 %v3420_v1  ;;  %2634 = vmatprep.subr.bf16.mxu1 %v3420_v1  ;;  %v946_v19 = vadd.f32 %v945_v16, %v3835_v40 }
 0x20b   : > { %v949_v18 = vpop.f32.mrb[14].mxu1  ;;  %v948_v22 = vadd.f32 %v947_v17, %v3837_v42 }
 0x20c   : > { %v950_v20 = vadd.f32 %v949_v18, %v3835_v40  ;;  %v951_v21 = vpop.f32.mrb[15].mxu1 }
 0x20d   : > { %v952_v23 = vadd.f32 %v951_v21, %v3837_v42 }
 0x20e   : > { %v3890_v24 = vpack.c.bf16 %v950_v20, %v946_v19 }
 0x20f   : > { %v3892_v25 = vpack.c.bf16 %v952_v23, %v948_v22 }
 0x210   : > { %1157 = vrot.lane.b32.xlu1 %v3890_v24, %s3422_s26  ;;  %v1032_v26 = vsel %vm1018_vm1, %v3890_v24, 0 }
 0x211   : > { %v955_v27 = vpop.f32.mrb[16].mxu1  ;;  %2615 = vmatpush3.bf16.xpose.msra.mxu0 %v1032_v26  ;;  %2635 = vmatpush3.bf16.msra.mxu1 %v3892_v25 }
 0x212   : > { %v957_v28 = vpop.f32.mrb[17].mxu1  ;;  %2636 = vmatprep.subr.bf16.mxu1 %v3420_v1  ;;  %2616 = vmatprep.subr.bf16.mxu0 %v3420_v1  ;;  %v956_v30 = vadd.f32 %v955_v27, %v3835_v40 }
 0x213   : > { %v959_v29 = vpop.f32.mrb[18].mxu1  ;;  %v958_v33 = vadd.f32 %v957_v28, %v3837_v42 }
 0x214   : > { %v960_v31 = vadd.f32 %v959_v29, %v3835_v40  ;;  %v961_v32 = vpop.f32.mrb[19].mxu1 }
 0x215   : > { %v962_v34 = vadd.f32 %v961_v32, %v3837_v42 }
 0x216   : > { %v3905_v36 = vpack.c.bf16 %v960_v31, %v956_v30 }
 0x217   : > { %v3907_v37 = vpack.c.bf16 %v962_v34, %v958_v33 }
 0x218   : > { %1159 = vrot.lane.b32.xlu0 %v3905_v36, %s3422_s26  ;;  %v1035_v38 = vsel %vm1018_vm1, %v3905_v36, 0 }
 0x219   : > { %v965_v39 = vpop.f32.mrb[20].mxu1  ;;  %2617 = vmatpush3.bf16.xpose.msra.mxu0 %v1035_v38  ;;  %2637 = vmatpush3.bf16.msra.mxu1 %v3907_v37 }
 0x21a   : > { %v967_v41 = vpop.f32.mrb[21].mxu1  ;;  %2618 = vmatprep.subr.bf16.mxu0 %v3420_v1  ;;  %2638 = vmatprep.subr.bf16.mxu1 %v3420_v1  ;;  %v966_v44 = vadd.f32 %v965_v39, %v3835_v40 }
 0x21b   : > { %v969_v43 = vpop.f32.mrb[22].mxu1  ;;  %v968_v47 = vadd.f32 %v967_v41, %v3837_v42  ;;  %v3993_v41 = vand.u32 127, %v743_v35 }
 0x21c   : > { %v970_v45 = vadd.f32 %v969_v43, %v3835_v40  ;;  %v971_v46 = vpop.f32.mrb[23].mxu1 }
 0x21d   : > { %v972_v48 = vadd.f32 %v971_v46, %v3837_v42  ;;  %vm1000_vm2 = vcmp.lt.s32.totalorder %v3993_v41, 10 }
 0x21e   : > { %v3920_v49 = vpack.c.bf16 %v970_v45, %v966_v44 }
 0x21f   : > { %v3922_v52 = vpack.c.bf16 %v972_v48, %v968_v47 }
 0x220   : > { %1161 = vrot.lane.b32.xlu1 %v3920_v49, %s3422_s26  ;;  %v1038_v53 = vsel %vm1018_vm1, %v3920_v49, 0 }
 0x221   : > { %v975_v54 = vpop.f32.mrb[24].mxu1  ;;  %2619 = vmatpush3.bf16.xpose.msra.mxu0 %v1038_v53  ;;  %2639 = vmatpush3.bf16.msra.mxu1 %v3922_v52 }
 0x222   : > { %v977_v56 = vpop.f32.mrb[25].mxu1  ;;  %2640 = vmatprep.subr.bf16.mxu1 %v3420_v1  ;;  %2620 = vmatprep.subr.bf16.mxu0 %v3420_v1  ;;  %v976_v58 = vadd.f32 %v975_v54, %v3835_v40 }
 0x223   : > { %v979_v57 = vpop.f32.mrb[26].mxu1  ;;  %v978_v2 = vadd.f32 %v977_v56, %v3837_v42 }
 0x224   : > { %v980_v59 = vadd.f32 %v979_v57, %v3835_v40  ;;  %v981_v60 = vpop.f32.mrb[27].mxu1 }
 0x225   : > { %v982_v3 = vadd.f32 %v981_v60, %v3837_v42 }
 0x226   : > { %v3939_v4 = vpack.c.bf16 %v980_v59, %v976_v58 }
 0x227   : > { %v3941_v5 = vpack.c.bf16 %v982_v3, %v978_v2 }
 0x228   : > { %1163 = vrot.lane.b32.xlu0 %v3939_v4, %s3422_s26  ;;  %v1041_v6 = vsel %vm1018_vm1, %v3939_v4, 0 }
 0x229   : > { %v985_v8 = vpop.f32.mrb[28].mxu1  ;;  %2621 = vmatpush3.bf16.xpose.msra.mxu0 %v1041_v6  ;;  %2641 = vmatpush3.bf16.msra.mxu1 %v3941_v5 }
 0x22a   : > { %v987_v63 = vpop.f32.mrb[29].mxu1  ;;  %2622 = vmatprep.subr.bf16.mxu0 %v3420_v1  ;;  %2642 = vmatprep.subr.bf16.mxu1 %v3420_v1  ;;  %v986_v10 = vadd.f32 %v985_v8, %v3835_v40 }
 0x22b   : > { %v989_v9 = vpop.f32.mrb[30].mxu1  ;;  %v988_v15 = vadd.f32 %v987_v63, %v3837_v42 }
 0x22c   : > { %v990_v11 = vadd.f32 %v989_v9, %v3835_v40  ;;  %v991_v12 = vpop.f32.mrb[31].mxu1  ;;  %1141 = vrot.lane.b32.xlu0 %v3947_v7, %s3422_s26 }
 0x22d   : > { %v992_v16 = vadd.f32 %v991_v12, %v3837_v42 }
 0x22e   : > { %v3958_v17 = vpack.c.bf16 %v990_v11, %v986_v10 }
 0x22f   : > { %v3960_v18 = vpack.c.bf16 %v992_v16, %v988_v15 }
 0x230   : > { %1165 = vrot.lane.b32.xlu1 %v3958_v17, %s3422_s26  ;;  %v1044_v19 = vsel %vm1018_vm1, %v3958_v17, 0 }
 0x231   : > { %2623 = vmatpush3.bf16.xpose.msra.mxu0 %v1044_v19  ;;  %2643 = vmatpush3.bf16.msra.mxu1 %v3960_v18 }
 0x232   : > { %2648 = vmatprep.subr.bf16.mxu0 %v3420_v1  ;;  %2668 = vmatprep.subr.bf16.mxu1 %v3420_v1 }
 0x238   : > { %2625 = vmatmul.mubr.msk.bf16.vlgmr.msra.gmra.mrb[4].mxu0 %vm1018_vm1, %v3947_v7 }
 0x239   : > { %2664 = vmatprep.mubr.msk.bf16.mxu0 %vm3421_vm0, %v3420_v1 }
 0x26a   : > { %v1152_v40 = vpop.permute.xlu0 %1151 }
 0x26b   : > { %v1171_v42 = vsel %vm1018_vm1, %v1152_v40, 0 }
 0x26c   : > { %2649 = vmatpush3.bf16.xpose.msra.mxu0 %v1171_v42 }
 0x26d   : > { %2650 = vmatprep.subr.bf16.mxu0 %v3420_v1 }
 0x272   : > { %v1154_v20 = vpop.permute.xlu0 %1153 }
 0x273   : > { %v1174_v21 = vsel %vm1018_vm1, %v1154_v20, 0 }
 0x274   : > { %2651 = vmatpush3.bf16.xpose.msra.mxu0 %v1174_v21 }
 0x275   : > { %2652 = vmatprep.subr.bf16.mxu0 %v3420_v1 }
 0x27a   : > { %v1156_v22 = vpop.permute.xlu1 %1155 }
 0x27b   : > { %v1177_v23 = vsel %vm1018_vm1, %v1156_v22, 0 }
 0x27c   : > { %2653 = vmatpush3.bf16.xpose.msra.mxu0 %v1177_v23  ;;  %v995_v23 = vld [vmem:[#allocation10 + $0x4] sm:$0xf] }
 0x27d   : > { %2654 = vmatprep.subr.bf16.mxu0 %v3420_v1 }
 0x282   : > { %v1158_v26 = vpop.permute.xlu1 %1157 }
 0x283   : > { %v1180_v27 = vsel %vm1018_vm1, %v1158_v26, 0  ;;  %v1325_v26 = vsel %vm1323_vm3, %v995_v23, 0 }
 0x284   : > { %2655 = vmatpush3.bf16.xpose.msra.mxu0 %v1180_v27 }
 0x285   : > { %2656 = vmatprep.subr.bf16.mxu0 %v3420_v1 }
 0x28a   : > { %v1160_v28 = vpop.permute.xlu0 %1159 }
 0x28b   : > { %v1183_v29 = vsel %vm1018_vm1, %v1160_v28, 0  ;;  %v994_v28 = vld [vmem:[#allocation10] sm:$0xf] }
 0x28c   : > { %2657 = vmatpush3.bf16.xpose.msra.mxu0 %v1183_v29 }
 0x28d   : > { %2658 = vmatprep.subr.bf16.mxu0 %v3420_v1 }
 0x292   : > { %v1162_v30 = vpop.permute.xlu1 %1161 }
 0x293   : > { %v1186_v31 = vsel %vm1018_vm1, %v1162_v30, 0 }
 0x294   : > { %2659 = vmatpush3.bf16.xpose.msra.mxu0 %v1186_v31  ;;  %v1371_v31 = vsel %vm1323_vm3, %v994_v28, 0 }
 0x295   : > { %2660 = vmatprep.subr.bf16.mxu0 %v3420_v1 }
 0x29a   : > { %v1164_v32 = vpop.permute.xlu0 %1163 }
 0x29b   : > { %v1189_v33 = vsel %vm1018_vm1, %v1164_v32, 0 }
 0x29c   : > { %2661 = vmatpush3.bf16.xpose.msra.mxu0 %v1189_v33 }
 0x29d   : > { %2662 = vmatprep.subr.bf16.mxu0 %v3420_v1 }
 0x29e   : > { %v1142_v39 = vpop.permute.xlu0 %1141 }
 0x2a2   : > { %v1166_v34 = vpop.permute.xlu1 %1165 }
 0x2a3   : > { %v1192_v38 = vsel %vm1018_vm1, %v1166_v34, 0 }
 0x2a4   : > { %2663 = vmatpush3.bf16.xpose.msra.mxu0 %v1192_v38 }
 0x2a5   : > { %2688 = vmatprep.subr.bf16.mxu0 %v3420_v1 }
 0x2ab   : > { %2665 = vmatmul.mubr.msk.bf16.vlgmr.msra.gmra.mrb[8].mxu0 %vm1018_vm1, %v1142_v39 }
 0x2ac   : > { %2690 = vmatprep.mubr.msk.bf16.mxu0 %vm3421_vm0, %v3420_v1  ;;  %2689 = vmatpush3.bf16.msra.mxu0 %v1325_v26 }
 0x2ad   : > { %2720 = vmatprep.subr.bf16.mxu0 %v3420_v1 }
 0x30b   : > { %v1080_v43 = vpop.f32.mrb[4].mxu0 }
 0x30c   : > { %v3996_v44 = vmul.f32 0.35355338, %v1080_v43  ;;  %v2626_v45 = vpop.f32.mrb[5].mxu0 }
 0x30d   : > { %v1083_v46 = vpop.f32.mrb[6].mxu0 }
 0x30e   : > { %v2627_v47 = vpop.f32.mrb[7].mxu0  ;;  %v1088_v48 = vsel %vm1000_vm2, %v3996_v44, -1e+30 }
 0x30f   : > { %1089 = vmax.xlane.f32.xlu1 %v1088_v48 }
 0x320   : > { %1255 = vrot.lane.b32.xlu1 %v3845_v51, %s3422_s26 }
 0x324   : > { %1259 = vrot.lane.b32.xlu1 %v3877_v14, %s3422_s26 }
 0x328   : > { %1261 = vrot.lane.b32.xlu1 %v3892_v25, %s3422_s26 }
 0x32c   : > { %1263 = vrot.lane.b32.xlu1 %v3907_v37, %s3422_s26 }
 0x330   : > { %1267 = vrot.lane.b32.xlu1 %v3941_v5, %s3422_s26 }
 0x334   : > { %1415 = vrot.lane.b32.xlu1 %v3843_v50, %s3423_s22 }
 0x338   : > { %1419 = vrot.lane.b32.xlu1 %v3875_v13, %s3423_s22 }
 0x33c   : > { %1423 = vrot.lane.b32.xlu1 %v3905_v36, %s3423_s22 }
 0x340   : > { %1427 = vrot.lane.b32.xlu1 %v3939_v4, %s3423_s22 }
 0x344   : > { %1413 = vrot.lane.b32.xlu1 %v3947_v7, %s3423_s22 }
 0x348   : > { %1511 = vrot.lane.b32.xlu1 %v3845_v51, %s3423_s22 }
 0x34c   : > { %1515 = vrot.lane.b32.xlu1 %v3877_v14, %s3423_s22 }
 0x350   : > { %1521 = vrot.lane.b32.xlu1 %v3922_v52, %s3423_s22 }
 0x37e   : > { %v1228_v35 = vpop.f32.mrb[8].mxu0 }
 0x37f   : > { %v2666_v53 = vpop.f32.mrb[9].mxu0  ;;  %v4027_v60 = vmul.f32 0.35355338, %v1228_v35 }
 0x380   : > { %v1231_v54 = vpop.f32.mrb[10].mxu0 }
 0x381   : > { %v2667_v55 = vpop.f32.mrb[11].mxu0  ;;  %v1236_v0 = vsel %vm1000_vm2, %v4027_v60, -1e+30 }
 0x39c   : > { %v1090_v56 = vpop.xlane.xlu1 %1089 }
 0x39d   : > { %v1091_v57 = vsub.f32 %v1088_v48, %v1090_v56 }
 0x39f   : > { %v1092_v58 = vmul.f32 1.442695, %v1091_v57 }
 0x3a0   : > { %v1256_v10 = vpop.permute.xlu1 %1255 }
 0x3a1   : > { %3048 = vpow2.f32 %v1092_v58 }
 0x3a4   : > { %v1260_v15 = vpop.permute.xlu1 %1259 }
 0x3a8   : > { %v1262_v19 = vpop.permute.xlu1 %1261 }
 0x3ab   : > { %v3049_v59 = vpop.eup %3048 }
 0x3ac   : > { %1094 = vadd.xlane.f32.xlu0 %v3049_v59  ;;  %v1264_v40 = vpop.permute.xlu1 %1263 }
 0x3b0   : > { %1237 = vmax.xlane.f32.xlu0 %v1236_v0  ;;  %v1268_v20 = vpop.permute.xlu1 %1267 }
 0x3b4   : > { %v1416_v32 = vpop.permute.xlu1 %1415 }
 0x3b5   : > { %v1435_v43 = vsel %vm1018_vm1, %v1416_v32, 0 }
 0x3b8   : > { %v1420_v48 = vpop.permute.xlu1 %1419 }
 0x3b9   : > { %v1441_v35 = vsel %vm1018_vm1, %v1420_v48, 0 }
 0x3bc   : > { %v1424_v55 = vpop.permute.xlu1 %1423 }
 0x3bd   : > { %v1447_v56 = vsel %vm1018_vm1, %v1424_v55, 0 }
 0x3c6   : > { %1257 = vrot.lane.b32.xlu0 %v3860_v62, %s3422_s26 }
 0x3ca   : > { %1265 = vrot.lane.b32.xlu0 %v3922_v52, %s3422_s26 }
 0x439   : > { %v1095_v2 = vpop.xlane.xlu0 %1094 }
 0x43a   : > { %3050 = vrcp.f32 %v1095_v2 }
 0x43d   : > { %v1238_v3 = vpop.xlane.xlu0 %1237 }
 0x43e   : > { %v1239_v6 = vsub.f32 %v1236_v0, %v1238_v3 }
 0x440   : > { %v1240_v8 = vmul.f32 1.442695, %v1239_v6 }
 0x441   : > { %v1258_v16 = vpop.permute.xlu0 %1257 }
 0x442   : > { %3052 = vpow2.f32 %v1240_v8 }
 0x444   : > { %v3051_v63 = vpop.eup %3050 }
 0x445   : > { %v1097_v9 = vmul.f32 %v3051_v63, %v3049_v59  ;;  %v1266_v42 = vpop.permute.xlu0 %1265  ;;  %v1428_v59 = vpop.permute.xlu1 %1427 }
 0x446   : > { %v1453_v0 = vsel %vm1018_vm1, %v1428_v59, 0 }
 0x447   : > { %v1098_v11 = vpack.c.bf16 %v1097_v9, %v1097_v9 }
 0x449   : > { %2645 = vmatmul.mubr.bf16.vlgmr.msra.gmra.mrb[32].mxu1 %v1098_v11  ;;  %v1414_v6 = vpop.permute.xlu1 %1413 }
 0x44a   : > { %2669 = vmatpush3.bf16.msra.mxu1 %v1256_v10  ;;  %2684 = vmatprep.mubr.msk.bf16.mxu1 %vm3421_vm0, %v3420_v1 }
 0x44b   : > { %2670 = vmatprep.subr.bf16.mxu1 %v3420_v1 }
 0x44c   : > { %v3053_v12 = vpop.eup %3052 }
 0x44d   : > { %1242 = vadd.xlane.f32.xlu0 %v3053_v12  ;;  %v1512_v11 = vpop.permute.xlu1 %1511 }
 0x44e   : > { %2671 = vmatpush3.bf16.msra.mxu1 %v1258_v16 }
 0x44f   : > { %2672 = vmatprep.subr.bf16.mxu1 %v3420_v1 }
 0x452   : > { %2673 = vmatpush3.bf16.msra.mxu1 %v1260_v15 }
 0x453   : > { %2674 = vmatprep.subr.bf16.mxu1 %v3420_v1 }
 0x456   : > { %2675 = vmatpush3.bf16.msra.mxu1 %v1262_v19 }
 0x457   : > { %2676 = vmatprep.subr.bf16.mxu1 %v3420_v1 }
 0x45a   : > { %2677 = vmatpush3.bf16.msra.mxu1 %v1264_v40 }
 0x45b   : > { %2678 = vmatprep.subr.bf16.mxu1 %v3420_v1 }
 0x45e   : > { %2679 = vmatpush3.bf16.msra.mxu1 %v1266_v42 }
 0x45f   : > { %2680 = vmatprep.subr.bf16.mxu1 %v3420_v1 }
 0x462   : > { %2681 = vmatpush3.bf16.msra.mxu1 %v1268_v20  ;;  %v1235_v20 = vadd.f32 %v4027_v60, %v3996_v44 }
 0x463   : > { %1269 = vrot.lane.b32.xlu0 %v3960_v18, %s3422_s26  ;;  %2682 = vmatprep.subr.bf16.mxu1 %v3420_v1  ;;  %s4368_s26 = sld [smem:[#allocation31_spill]] }
 0x467   : > { %1417 = vrot.lane.b32.xlu0 %v3858_v61, %s3423_s22 }
 0x46b   : > { %1421 = vrot.lane.b32.xlu0 %v3890_v24, %s3423_s22 }
 0x46f   : > { %1425 = vrot.lane.b32.xlu0 %v3920_v49, %s3423_s22 }
 0x473   : > { %1429 = vrot.lane.b32.xlu0 %v3958_v17, %s3423_s22 }
 0x4da   : > { %v1243_v21 = vpop.xlane.xlu0 %1242 }
 0x4db   : > { %3054 = vrcp.f32 %v1243_v21 }
 0x4de   : > { %v1270_v22 = vpop.permute.xlu0 %1269 }
 0x4df   : > { %2683 = vmatpush3.bf16.msra.mxu1 %v1270_v22 }
 0x4e0   : > { %2694 = vmatprep.subr.bf16.mxu1 %v3420_v1 }
 0x4e2   : > { %v1418_v46 = vpop.permute.xlu0 %1417 }
 0x4e3   : > { %v1438_v47 = vsel %vm1018_vm1, %v1418_v46, 0 }
 0x4e5   : > { %v3055_v27 = vpop.eup %3054 }
 0x4e6   : > { %v1245_v29 = vmul.f32 %v3055_v27, %v3053_v12  ;;  %v1422_v53 = vpop.permute.xlu0 %1421 }
 0x4e7   : > { %v1444_v54 = vsel %vm1018_vm1, %v1422_v53, 0 }
 0x4e8   : > { %v1246_v30 = vpack.c.bf16 %v1245_v29, %v1245_v29 }
 0x4ea   : > { %2685 = vmatmul.mubr.bf16.vlgmr.msra.gmra.mrb[36].mxu1 %v1246_v30  ;;  %v1426_v57 = vpop.permute.xlu0 %1425 }
 0x4eb   : > { %2695 = vmatpush3.bf16.msra.mxu1 %v1371_v31  ;;  %2696 = vmatprep.mubr.msk.bf16.mxu1 %vm3421_vm0, %v3420_v1  ;;  %v1450_v58 = vsel %vm1018_vm1, %v1426_v57, 0 }
 0x4ec   : > { %2700 = vmatprep.subr.bf16.mxu1 %v3420_v1 }
 0x4ee   : > { %v1430_v2 = vpop.permute.xlu0 %1429 }
 0x4ef   : > { %v1456_v3 = vsel %vm1018_vm1, %v1430_v2, 0 }
 0x51c   : > { %v1133_v33 = vpop.f32.mrb[32].mxu1 }
 0x51d   : > { %v1139_v34 = vpack.c.bf16 %v1133_v33, %v1133_v33  ;;  %v2646_v38 = vpop.f32.mrb[33].mxu1 }
 0x51e   : > { %v1136_v39 = vpop.f32.mrb[34].mxu1 }
 0x51f   : > { %v2647_v45 = vpop.f32.mrb[35].mxu1  ;;  %2697 = vmatmul.mubr.msk.bf16.vlgmr.msra.gmra.mrb[40].mxu1 %vm1018_vm1, %v1139_v34 }
 0x520   : > { %2701 = vmatpush3.bf16.xpose.msra.mxu1 %v1435_v43  ;;  %2716 = vmatprep.mubr.msk.bf16.mxu1 %vm3421_vm0, %v3420_v1 }
 0x521   : > { %2702 = vmatprep.subr.bf16.mxu1 %v3420_v1 }
 0x528   : > { %2703 = vmatpush3.bf16.xpose.msra.mxu1 %v1438_v47 }
 0x529   : > { %2704 = vmatprep.subr.bf16.mxu1 %v3420_v1 }
 0x530   : > { %2705 = vmatpush3.bf16.xpose.msra.mxu1 %v1441_v35  ;;  %v996_v35 = vld [vmem:[#allocation10 + $0x8] sm:$0xf] }
 0x531   : > { %2706 = vmatprep.subr.bf16.mxu1 %v3420_v1 }
 0x538   : > { %2707 = vmatpush3.bf16.xpose.msra.mxu1 %v1444_v54 }
 0x539   : > { %2708 = vmatprep.subr.bf16.mxu1 %v3420_v1 }
 0x540   : > { %2709 = vmatpush3.bf16.xpose.msra.mxu1 %v1447_v56 }
 0x541   : > { %2710 = vmatprep.subr.bf16.mxu1 %v3420_v1 }
 0x548   : > { %2711 = vmatpush3.bf16.xpose.msra.mxu1 %v1450_v58 }
 0x549   : > { %2712 = vmatprep.subr.bf16.mxu1 %v3420_v1 }
 0x550   : > { %2713 = vmatpush3.bf16.xpose.msra.mxu1 %v1453_v0 }
 0x551   : > { %2714 = vmatprep.subr.bf16.mxu1 %v3420_v1 }
 0x558   : > { %2715 = vmatpush3.bf16.xpose.msra.mxu1 %v1456_v3 }
 0x559   : > { %2766 = vmatprep.subr.bf16.mxu1 %v3420_v1 }
 0x55f   : > { %2717 = vmatmul.mubr.msk.bf16.vlgmr.msra.gmra.mrb[44].mxu1 %vm1018_vm1, %v1414_v6 }
 0x560   : > { %2782 = vmatprep.mubr.msk.bf16.mxu1 %vm3421_vm0, %v3420_v1 }
 0x5bd   : > { %v1313_v8 = vpop.f32.mrb[36].mxu1 }
 0x5be   : > { %v1319_v63 = vpack.c.bf16 %v1313_v8, %v1313_v8  ;;  %v2686_v9 = vpop.f32.mrb[37].mxu1 }
 0x5bf   : > { %v1316_v10 = vpop.f32.mrb[38].mxu1 }
 0x5c0   : > { %v2687_v12 = vpop.f32.mrb[39].mxu1  ;;  %2691 = vmatmul.mubr.msk.bf16.vlgmr.msra.gmra.mrb[12].mxu0 %vm1018_vm1, %v1319_v63 }
 0x5c1   : > { %2721 = vmatpush3.bf16.msra.mxu0 %v1512_v11  ;;  %2736 = vmatprep.mubr.msk.bf16.mxu0 %vm3421_vm0, %v3420_v1 }
 0x5c2   : > { %2722 = vmatprep.subr.bf16.mxu0 %v3420_v1 }
 0x5f2   : > { %v1407_v15 = vpop.f32.mrb[40].mxu1 }
 0x5f3   : > { %v2698_v16 = vpop.f32.mrb[41].mxu1 }
 0x5f4   : > { %v1410_v19 = vpop.f32.mrb[42].mxu1 }
 0x5f5   : > { %v2699_v40 = vpop.f32.mrb[43].mxu1 }
 0x632   : > { %v1492_v42 = vpop.f32.mrb[44].mxu1 }
 0x633   : > { %v1498_v21 = vmul.f32 0.35355338, %v1492_v42  ;;  %v2718_v22 = vpop.f32.mrb[45].mxu1 }
 0x634   : > { %v1495_v23 = vpop.f32.mrb[46].mxu1 }
 0x635   : > { %v4090_v26 = vadd.f32 %v1498_v21, %v1235_v20  ;;  %v2719_v27 = vpop.f32.mrb[47].mxu1  ;;  %v1500_v28 = vsel %vm1000_vm2, %v1498_v21, -1e+30 }
 0x636   : > { %1501 = vmax.xlane.f32.xlu0 %v1500_v28 }
 0x64c   : > { %1513 = vrot.lane.b32.xlu0 %v3860_v62, %s3423_s22 }
 0x650   : > { %1517 = vrot.lane.b32.xlu0 %v3892_v25, %s3423_s22 }
 0x654   : > { %1519 = vrot.lane.b32.xlu0 %v3907_v37, %s3423_s22 }
 0x658   : > { %1523 = vrot.lane.b32.xlu0 %v3941_v5, %s3423_s22 }
 0x65c   : > { %1625 = vrot.lane.b32.xlu0 %v3843_v50, %s3424_s14 }
 0x660   : > { %1629 = vrot.lane.b32.xlu0 %v3875_v13, %s3424_s14 }
 0x664   : > { %1633 = vrot.lane.b32.xlu0 %v3905_v36, %s3424_s14 }
 0x668   : > { %1637 = vrot.lane.b32.xlu0 %v3939_v4, %s3424_s14 }
 0x66c   : > { %1623 = vrot.lane.b32.xlu0 %v3947_v7, %s3424_s14 }
 0x670   : > { %1721 = vrot.lane.b32.xlu0 %v3845_v51, %s3424_s14  ;;  %v1516_v51 = vpop.permute.xlu1 %1515 }
 0x674   : > { %1725 = vrot.lane.b32.xlu0 %v3877_v14, %s3424_s14  ;;  %v1522_v33 = vpop.permute.xlu1 %1521 }
 0x678   : > { %1731 = vrot.lane.b32.xlu0 %v3922_v52, %s3424_s14 }
 0x693   : > { %v1361_v50 = vpop.f32.mrb[12].mxu0 }
 0x694   : > { %v4118_v13 = vadd.f32 %v1407_v15, %v1361_v50  ;;  %v2692_v44 = vpop.f32.mrb[13].mxu0 }
 0x695   : > { %v1364_v36 = vpop.f32.mrb[14].mxu0 }
 0x696   : > { %v2693_v60 = vpop.f32.mrb[15].mxu0 }
 0x6c3   : > { %v1502_v29 = vpop.xlane.xlu0 %1501 }
 0x6c4   : > { %v1503_v4 = vsub.f32 %v1500_v28, %v1502_v29 }
 0x6c6   : > { %v1504_v30 = vmul.f32 1.442695, %v1503_v4 }
 0x6c7   : > { %v1514_v31 = vpop.permute.xlu0 %1513 }
 0x6c8   : > { %3056 = vpow2.f32 %v1504_v30  ;;  %2723 = vmatpush3.bf16.msra.mxu0 %v1514_v31 }
 0x6c9   : > { %2724 = vmatprep.subr.bf16.mxu0 %v3420_v1 }
 0x6cb   : > { %v1518_v7 = vpop.permute.xlu0 %1517 }
 0x6cc   : > { %2725 = vmatpush3.bf16.msra.mxu0 %v1516_v51  ;;  %v997_v51 = vld [vmem:[#allocation10 + $0xc] sm:$0xf] }
 0x6cd   : > { %2726 = vmatprep.subr.bf16.mxu0 %v3420_v1 }
 0x6cf   : > { %v1520_v14 = vpop.permute.xlu0 %1519 }
 0x6d0   : > { %2727 = vmatpush3.bf16.msra.mxu0 %v1518_v7 }
 0x6d1   : > { %2728 = vmatprep.subr.bf16.mxu0 %v3420_v1 }
 0x6d2   : > { %v3057_v52 = vpop.eup %3056 }
 0x6d3   : > { %1506 = vadd.xlane.f32.xlu1 %v3057_v52  ;;  %v1524_v32 = vpop.permute.xlu0 %1523 }
 0x6d4   : > { %2729 = vmatpush3.bf16.msra.mxu0 %v1520_v14 }
 0x6d5   : > { %2730 = vmatprep.subr.bf16.mxu0 %v3420_v1 }
 0x6d7   : > { %v1626_v34 = vpop.permute.xlu0 %1625 }
 0x6d8   : > { %2731 = vmatpush3.bf16.msra.mxu0 %v1522_v33  ;;  %v1645_v57 = vsel %vm1018_vm1, %v1626_v34, 0  ;;  %v3028_v33 = vld [vmem:[#allocation11 + $0x10] sm:$0xff]   ;;  %v3030_v34 = vld [vmem:[#allocation11 + $0x18] sm:$0xff]  }
 0x6d9   : > { %2732 = vmatprep.subr.bf16.mxu0 %v3420_v1 }
 0x6db   : > { %v1630_v38 = vpop.permute.xlu0 %1629 }
 0x6dc   : > { %2733 = vmatpush3.bf16.msra.mxu0 %v1524_v32  ;;  %v1651_v2 = vsel %vm1018_vm1, %v1630_v38, 0  ;;  %v3026_v32 = vld [vmem:[#allocation11 + $0x8] sm:$0xff]   ;;  %v3032_v38 = vld [vmem:[#allocation11 + $0x20] sm:$0xff]  }
 0x6dd   : > { %2734 = vmatprep.subr.bf16.mxu0 %v3420_v1 }
 0x6df   : > { %v1634_v39 = vpop.permute.xlu0 %1633 }
 0x6e0   : > { %v1657_v8 = vsel %vm1018_vm1, %v1634_v39, 0  ;;  %v3034_v39 = vld [vmem:[#allocation11 + $0x28] sm:$0xff]  }
 0x6e3   : > { %v1638_v43 = vpop.permute.xlu0 %1637 }
 0x6e4   : > { %1525 = vrot.lane.b32.xlu1 %v3960_v18, %s3423_s22  ;;  %v1663_v10 = vsel %vm1018_vm1, %v1638_v43, 0  ;;  %v3036_v43 = vld [vmem:[#allocation11 + $0x30] sm:$0xff]   ;;  %s4369_s22 = sld [smem:[#allocation34_spill]] }
 0x6e7   : > { %v1624_v45 = vpop.permute.xlu0 %1623 }
 0x6e8   : > { %1627 = vrot.lane.b32.xlu1 %v3858_v61, %s3424_s14 }
 0x6eb   : > { %v1722_v46 = vpop.permute.xlu0 %1721 }
 0x6ec   : > { %1631 = vrot.lane.b32.xlu1 %v3890_v24, %s3424_s14  ;;  %2767 = vmatpush3.bf16.msra.mxu1 %v1722_v46  ;;  %v1580_v24 = vsel %vm1323_vm3, %v996_v35, 0  ;;  %v3025_v46 = vld [vmem:[#allocation13] sm:$0xff]  }
 0x6ed   : > { %2768 = vmatprep.subr.bf16.mxu1 %v3420_v1 }
 0x6ef   : > { %v1726_v60 = vpop.permute.xlu0 %1725 }
 0x6f0   : > { %1635 = vrot.lane.b32.xlu1 %v3920_v49, %s3424_s14 }
 0x6f4   : > { %1639 = vrot.lane.b32.xlu1 %v3958_v17, %s3424_s14 }
 0x760   : > { %v1507_v47 = vpop.xlane.xlu1 %1506 }
 0x761   : > { %3058 = vrcp.f32 %v1507_v47 }
 0x764   : > { %v1526_v48 = vpop.permute.xlu1 %1525 }
 0x765   : > { %2735 = vmatpush3.bf16.msra.mxu0 %v1526_v48 }
 0x766   : > { %2740 = vmatprep.subr.bf16.mxu0 %v3420_v1 }
 0x768   : > { %v1628_v59 = vpop.permute.xlu1 %1627 }
 0x769   : > { %v1648_v0 = vsel %vm1018_vm1, %v1628_v59, 0 }
 0x76b   : > { %v3059_v61 = vpop.eup %3058 }
 0x76c   : > { %v1509_v53 = vmul.f32 %v3059_v61, %v3057_v52  ;;  %v1632_v3 = vpop.permute.xlu1 %1631  ;;  %v1790_v52 = vsel %vm1323_vm3, %v997_v51, 0 }
 0x76d   : > { %v1654_v6 = vsel %vm1018_vm1, %v1632_v3, 0 }
 0x76e   : > { %v1510_v54 = vpack.c.bf16 %v1509_v53, %v1509_v53  ;;  %v3027_v53 = vld [vmem:[#allocation13 + $0x8] sm:$0xff]  }
 0x770   : > { %2737 = vmatmul.mubr.bf16.vlgmr.msra.gmra.mrb[16].mxu0 %v1510_v54  ;;  %v1636_v63 = vpop.permute.xlu1 %1635  ;;  %v3029_v54 = vld [vmem:[#allocation13 + $0x10] sm:$0xff]  }
 0x771   : > { %2741 = vmatpush3.bf16.msra.mxu0 %v1580_v24  ;;  %2742 = vmatprep.mubr.msk.bf16.mxu0 %vm3421_vm0, %v3420_v1  ;;  %v1660_v9 = vsel %vm1018_vm1, %v1636_v63, 0  ;;  %v3031_v24 = vld [vmem:[#allocation13 + $0x18] sm:$0xff]  }
 0x772   : > { %2746 = vmatprep.subr.bf16.mxu0 %v3420_v1 }
 0x774   : > { %v1640_v11 = vpop.permute.xlu1 %1639 }
 0x775   : > { %v1666_v12 = vsel %vm1018_vm1, %v1640_v11, 0  ;;  %v3041_v11 = vld [vmem:[#allocation14 + $0x8] sm:$0xff]  }
 0x843   : > { %v1569_v49 = vpop.f32.mrb[16].mxu0 }
 0x844   : > { %v1575_v17 = vpack.c.bf16 %v1569_v49, %v1569_v49  ;;  %v2738_v55 = vpop.f32.mrb[17].mxu0  ;;  %v3033_v49 = vld [vmem:[#allocation13 + $0x20] sm:$0xff]  }
 0x845   : > { %v1572_v56 = vpop.f32.mrb[18].mxu0  ;;  %v3037_v55 = vld [vmem:[#allocation13 + $0x30] sm:$0xff]  }
 0x846   : > { %v2739_v58 = vpop.f32.mrb[19].mxu0  ;;  %2743 = vmatmul.mubr.msk.bf16.vlgmr.msra.gmra.mrb[20].mxu0 %vm1018_vm1, %v1575_v17  ;;  %v3035_v17 = vld [vmem:[#allocation13 + $0x28] sm:$0xff]   ;;  %v3038_v56 = vld [vmem:[#allocation11 + $0x38] sm:$0xff]  }
 0x847   : > { %2747 = vmatpush3.bf16.xpose.msra.mxu0 %v1645_v57  ;;  %2762 = vmatprep.mubr.msk.bf16.mxu0 %vm3421_vm0, %v3420_v1  ;;  %v3039_v57 = vld [vmem:[#allocation13 + $0x38] sm:$0xff]  }
 0x848   : > { %2748 = vmatprep.subr.bf16.mxu0 %v3420_v1  ;;  %v3064_v58 = vld [vmem:[%s3784_s7] sm:$0xf]  ;;  %s3425_s7 = smov [#allocation17]  }
 0x849   : > { %s3295_s17 = sshll.u32 %s3425_s7, 4  ;;  %s3296_s17 = int_to_ptr.vmem [resolvable:$false] %s3295_s17 }
 0x84a   : > { %p3298_p13 = scmp.lt.s32.totalorder %s2207_s13, %s3296_s17 }
 0x84f   : > { %2749 = vmatpush3.bf16.xpose.msra.mxu0 %v1648_v0  ;;  %v2439_v0 = vld [vmem:[%s4367_s20] ss:$0 sm:$0xff]  ;;  %s3291_s20 = scalar_lea.vmem %s2207_s13, 128 }
 0x850   : > { %2750 = vmatprep.subr.bf16.mxu0 %v3420_v1  ;;  %p3292_p10 = scmp.ne.s32.totalorder %s2207_s13, %s3291_s20 }
 0x852   : > { %p3293_p11 = pnand %p3292_p10, %p4370_p1 }
 0x854   : > { %p3294_p12 = pneg %p3293_p11 }
 0x857   : > { %2751 = vmatpush3.bf16.xpose.msra.mxu0 %v1651_v2 }
 0x858   : > { %2752 = vmatprep.subr.bf16.mxu0 %v3420_v1 }
 0x85f   : > { %2753 = vmatpush3.bf16.xpose.msra.mxu0 %v1654_v6 }
 0x860   : > { %2754 = vmatprep.subr.bf16.mxu0 %v3420_v1 }
 0x867   : > { %2755 = vmatpush3.bf16.xpose.msra.mxu0 %v1657_v8 }
 0x868   : > { %2756 = vmatprep.subr.bf16.mxu0 %v3420_v1 }
 0x86f   : > { %2757 = vmatpush3.bf16.xpose.msra.mxu0 %v1660_v9  ;;  %v3040_v9 = vld [vmem:[#allocation14] sm:$0xff]  }
 0x870   : > { %2758 = vmatprep.subr.bf16.mxu0 %v3420_v1 }
 0x877   : > { %2759 = vmatpush3.bf16.xpose.msra.mxu0 %v1663_v10 }
 0x878   : > { %2760 = vmatprep.subr.bf16.mxu0 %v3420_v1 }
 0x87f   : > { %2761 = vmatpush3.bf16.xpose.msra.mxu0 %v1666_v12  ;;  %v3042_v12 = vld [vmem:[#allocation14 + $0x10] sm:$0xff]  }
 0x880   : > { %2812 = vmatprep.subr.bf16.mxu0 %v3420_v1 }
 0x886   : > { %2763 = vmatmul.mubr.msk.bf16.vlgmr.msra.gmra.mrb[24].mxu0 %vm1018_vm1, %v1624_v45 }
 0x887   : > { %2828 = vmatprep.mubr.msk.bf16.mxu0 %vm3421_vm0, %v3420_v1 }
 0x919   : > { %v1616_v15 = vpop.f32.mrb[20].mxu0 }
 0x91a   : > { %v4165_v16 = vadd.f32 %v1616_v15, %v4118_v13  ;;  %v2744_v19 = vpop.f32.mrb[21].mxu0  ;;  %v3043_v15 = vld [vmem:[#allocation14 + $0x18] sm:$0xff]  }
 0x91b   : > { %v1619_v40 = vpop.f32.mrb[22].mxu0  ;;  %v3045_v19 = vld [vmem:[#allocation14 + $0x28] sm:$0xff]  }
 0x91c   : > { %v2745_v42 = vpop.f32.mrb[23].mxu0 }
 0x959   : > { %v1702_v20 = vpop.f32.mrb[24].mxu0 }
 0x95a   : > { %v1708_v21 = vmul.f32 0.35355338, %v1702_v20  ;;  %v2764_v22 = vpop.f32.mrb[25].mxu0 }
 0x95b   : > { %v1705_v23 = vpop.f32.mrb[26].mxu0  ;;  %v3046_v22 = vld [vmem:[#allocation14 + $0x30] sm:$0xff]  }
 0x95c   : > { %v1709_v27 = vadd.f32 %v1708_v21, %v4090_v26  ;;  %v2765_v28 = vpop.f32.mrb[27].mxu0  ;;  %v1710_v50 = vsel %vm1000_vm2, %v1708_v21, -1e+30  ;;  %v3047_v23 = vld [vmem:[#allocation14 + $0x38] sm:$0xff]  }
 0x95d   : > { %1711 = vmax.xlane.f32.xlu1 %v1710_v50  ;;  %v2456_v28 = vld [vmem:[%s4368_s26] ss:$0 sm:$0xff]  ;;  %s3297_s26 = scalar_lea.vmem %s3296_s17, 256 }
 0x95e   : > { %v2172_v44 = vmul.f32 0.25, %v1709_v27  ;;  %p3299_p3 = scmp.lt.s32.totalorder %s3297_s26, %s3291_s20 }
 0x960   : > { %2173 = vst [vmem:[%s4173_s24] sm:$0xff] %v2172_v44  ;;  %p3300_p6 = por %p3299_p3, %p3298_p13 }
 0x962   : > { %p3301_p9 = pnand %p3300_p6, %p3294_p12 }
 0x96e   : > { %1723 = vrot.lane.b32.xlu1 %v3860_v62, %s3424_s14 }
 0x972   : > { %1727 = vrot.lane.b32.xlu1 %v3892_v25, %s3424_s14 }
 0x976   : > { %1729 = vrot.lane.b32.xlu1 %v3907_v37, %s3424_s14 }
 0x97a   : > { %1733 = vrot.lane.b32.xlu1 %v3941_v5, %s3424_s14  ;;  %v1732_v5 = vpop.permute.xlu0 %1731 }
 0x9ea   : > { %v1712_v41 = vpop.xlane.xlu1 %1711 }
 0x9eb   : > { %v1713_v26 = vsub.f32 %v1710_v50, %v1712_v41 }
 0x9ed   : > { %v1714_v13 = vmul.f32 1.442695, %v1713_v26 }
 0x9ee   : > { %v1724_v36 = vpop.permute.xlu1 %1723 }
 0x9ef   : > { %3060 = vpow2.f32 %v1714_v13  ;;  %2769 = vmatpush3.bf16.msra.mxu1 %v1724_v36 }
 0x9f0   : > { %2770 = vmatprep.subr.bf16.mxu1 %v3420_v1 }
 0x9f2   : > { %v1728_v62 = vpop.permute.xlu1 %1727 }
 0x9f3   : > { %2771 = vmatpush3.bf16.msra.mxu1 %v1726_v60 }
 0x9f4   : > { %2772 = vmatprep.subr.bf16.mxu1 %v3420_v1 }
 0x9f6   : > { %v1730_v37 = vpop.permute.xlu1 %1729 }
 0x9f7   : > { %2773 = vmatpush3.bf16.msra.mxu1 %v1728_v62 }
 0x9f8   : > { %2774 = vmatprep.subr.bf16.mxu1 %v3420_v1 }
 0x9f9   : > { %v3061_v25 = vpop.eup %3060 }
 0x9fa   : > { %1716 = vadd.xlane.f32.xlu0 %v3061_v25  ;;  %v1734_v29 = vpop.permute.xlu1 %1733 }
 0x9fb   : > { %2775 = vmatpush3.bf16.msra.mxu1 %v1730_v37 }
 0x9fc   : > { %2776 = vmatprep.subr.bf16.mxu1 %v3420_v1 }
 0x9ff   : > { %2777 = vmatpush3.bf16.msra.mxu1 %v1732_v5 }
 0xa00   : > { %2778 = vmatprep.subr.bf16.mxu1 %v3420_v1 }
 0xa03   : > { %2779 = vmatpush3.bf16.msra.mxu1 %v1734_v29 }
 0xa04   : > { %2780 = vmatprep.subr.bf16.mxu1 %v3420_v1 }
 0xa10   : > { %1735 = vrot.lane.b32.xlu0 %v3960_v18, %s3424_s14  ;;  %v3024_v18 = vld [vmem:[#allocation11] sm:$0xff]   ;;  %s4238_s14 = scalar_lea.hbm %s4369_s22, %s4335_s10 }
 0xa11   : > { %2813 = vmatpush3.bf16.msra.mxu0 %v3024_v18 }
 0xa12   : > { %2814 = vmatprep.subr.bf16.mxu0 %v3420_v1 }
 0xa15   : > { %2815 = vmatpush3.bf16.msra.mxu0 %v3026_v32 }
 0xa16   : > { %2816 = vmatprep.subr.bf16.mxu0 %v3420_v1 }
 0xa19   : > { %2817 = vmatpush3.bf16.msra.mxu0 %v3028_v33 }
 0xa1a   : > { %2818 = vmatprep.subr.bf16.mxu0 %v3420_v1 }
 0xa1d   : > { %2819 = vmatpush3.bf16.msra.mxu0 %v3030_v34 }
 0xa1e   : > { %2820 = vmatprep.subr.bf16.mxu0 %v3420_v1 }
 0xa21   : > { %2821 = vmatpush3.bf16.msra.mxu0 %v3032_v38 }
 0xa22   : > { %2822 = vmatprep.subr.bf16.mxu0 %v3420_v1 }
 0xa25   : > { %2823 = vmatpush3.bf16.msra.mxu0 %v3034_v39 }
 0xa26   : > { %2824 = vmatprep.subr.bf16.mxu0 %v3420_v1 }
 0xa29   : > { %2825 = vmatpush3.bf16.msra.mxu0 %v3036_v43 }
 0xa2a   : > { %2826 = vmatprep.subr.bf16.mxu0 %v3420_v1 }
 0xa2d   : > { %2827 = vmatpush3.bf16.msra.mxu0 %v3038_v56 }
 0xa30   : > { %2829 = vmatmul.mubr.bf16.vlgmr.msra.gmra.mrb[28].mxu0 %v3064_v58 }
 0xa87   : > { %v1717_v4 = vpop.xlane.xlu0 %1716 }
 0xa88   : > { %3062 = vrcp.f32 %v1717_v4 }
 0xa8b   : > { %v1736_v30 = vpop.permute.xlu0 %1735 }
 0xa8c   : > { %2781 = vmatpush3.bf16.msra.mxu1 %v1736_v30 }
 0xa8d   : > { %2786 = vmatprep.subr.bf16.mxu1 %v3420_v1 }
 0xa92   : > { %v3063_v31 = vpop.eup %3062 }
 0xa93   : > { %v1719_v7 = vmul.f32 %v3063_v31, %v3061_v25 }
 0xa95   : > { %v1720_v14 = vpack.c.bf16 %v1719_v7, %v1719_v7 }
 0xa97   : > { %2783 = vmatmul.mubr.bf16.vlgmr.msra.gmra.mrb[48].mxu1 %v1720_v14 }
 0xa98   : > { %2787 = vmatpush3.bf16.msra.mxu1 %v1790_v52  ;;  %2788 = vmatprep.mubr.msk.bf16.mxu1 %vm3421_vm0, %v3420_v1 }
 0xa99   : > { %2792 = vmatprep.subr.bf16.mxu1 %v3420_v1 }
 0xb03   : > { %v2044_v40 = vpop.f32.mrb[28].mxu0 }
 0xb04   : > { %v2830_v42 = vpop.f32.mrb[29].mxu0 }
 0xb05   : > { %v2047_v20 = vpop.f32.mrb[30].mxu0 }
 0xb06   : > { %v2831_v21 = vpop.f32.mrb[31].mxu0 }
 0xb6a   : > { %v1779_v45 = vpop.f32.mrb[48].mxu1 }
 0xb6b   : > { %v1785_v47 = vpack.c.bf16 %v1779_v45, %v1779_v45  ;;  %v2784_v48 = vpop.f32.mrb[49].mxu1 }
 0xb6c   : > { %v1782_v61 = vpop.f32.mrb[50].mxu1 }
 0xb6d   : > { %v2785_v35 = vpop.f32.mrb[51].mxu1  ;;  %2789 = vmatmul.mubr.msk.bf16.vlgmr.msra.gmra.mrb[52].mxu1 %vm1018_vm1, %v1785_v47 }
 0xb6e   : > { %2793 = vmatpush3.bf16.msra.mxu1 %v3025_v46  ;;  %2808 = vmatprep.mubr.msk.bf16.mxu1 %vm3421_vm0, %v3420_v1 }
 0xb6f   : > { %2794 = vmatprep.subr.bf16.mxu1 %v3420_v1 }
 0xb72   : > { %2795 = vmatpush3.bf16.msra.mxu1 %v3027_v53 }
 0xb73   : > { %2796 = vmatprep.subr.bf16.mxu1 %v3420_v1 }
 0xb76   : > { %2797 = vmatpush3.bf16.msra.mxu1 %v3029_v54 }
 0xb77   : > { %2798 = vmatprep.subr.bf16.mxu1 %v3420_v1 }
 0xb7a   : > { %2799 = vmatpush3.bf16.msra.mxu1 %v3031_v24 }
 0xb7b   : > { %2800 = vmatprep.subr.bf16.mxu1 %v3420_v1 }
 0xb7e   : > { %2801 = vmatpush3.bf16.msra.mxu1 %v3033_v49 }
 0xb7f   : > { %2802 = vmatprep.subr.bf16.mxu1 %v3420_v1 }
 0xb82   : > { %2803 = vmatpush3.bf16.msra.mxu1 %v3035_v17 }
 0xb83   : > { %2804 = vmatprep.subr.bf16.mxu1 %v3420_v1 }
 0xb86   : > { %2805 = vmatpush3.bf16.msra.mxu1 %v3037_v55 }
 0xb87   : > { %2806 = vmatprep.subr.bf16.mxu1 %v3420_v1 }
 0xb8a   : > { %2807 = vmatpush3.bf16.msra.mxu1 %v3039_v57 }
 0xb8b   : > { %2832 = vmatprep.subr.bf16.mxu1 %v3420_v1 }
 0xc40   : > { %v1826_v59 = vpop.f32.mrb[52].mxu1 }
 0xc41   : > { %v1832_v2 = vadd.f32 %v1826_v59, %v4165_v16  ;;  %v2790_v3 = vpop.f32.mrb[53].mxu1  ;;  %v3044_v16 = vld [vmem:[#allocation14 + $0x20] sm:$0xff]  }
 0xc42   : > { %v1829_v6 = vpop.f32.mrb[54].mxu1 }
 0xc43   : > { %v1840_v8 = vadd.f32 %v2439_v0, %v1832_v2  ;;  %v2791_v63 = vpop.f32.mrb[55].mxu1 }
 0xc45   : > { %v1857_v10 = vpack.c.bf16 %v1840_v8, %v1840_v8 }
 0xc47   : > { %2809 = vmatmul.mubr.bf16.vlgmr.msra.gmra.mrb[56].mxu1 %v1857_v10 }
 0xc48   : > { %2833 = vmatpush3.bf16.msra.mxu1 %v3040_v9  ;;  %2848 = vmatprep.mubr.msk.bf16.mxu1 %vm3421_vm0, %v3420_v1 }
 0xc49   : > { %2834 = vmatprep.subr.bf16.mxu1 %v3420_v1 }
 0xc4c   : > { %2835 = vmatpush3.bf16.msra.mxu1 %v3041_v11 }
 0xc4d   : > { %2836 = vmatprep.subr.bf16.mxu1 %v3420_v1 }
 0xc50   : > { %2837 = vmatpush3.bf16.msra.mxu1 %v3042_v12 }
 0xc51   : > { %2838 = vmatprep.subr.bf16.mxu1 %v3420_v1 }
 0xc54   : > { %2839 = vmatpush3.bf16.msra.mxu1 %v3043_v15 }
 0xc55   : > { %2840 = vmatprep.subr.bf16.mxu1 %v3420_v1 }
 0xc58   : > { %2841 = vmatpush3.bf16.msra.mxu1 %v3044_v16 }
 0xc59   : > { %2842 = vmatprep.subr.bf16.mxu1 %v3420_v1 }
 0xc5c   : > { %2843 = vmatpush3.bf16.msra.mxu1 %v3045_v19 }
 0xc5d   : > { %2844 = vmatprep.subr.bf16.mxu1 %v3420_v1 }
 0xc60   : > { %2845 = vmatpush3.bf16.msra.mxu1 %v3046_v22 }
 0xc61   : > { %2846 = vmatprep.subr.bf16.mxu1 %v3420_v1 }
 0xc64   : > { %2847 = vmatpush3.bf16.msra.mxu1 %v3047_v23 }
 0xd1a   : > { %v1956_v27 = vpop.f32.mrb[56].mxu1 }
 0xd1b   : > { %v2045_v50 = vadd.f32 %v2044_v40, %v1956_v27  ;;  %v2810_v44 = vpop.f32.mrb[57].mxu1 }
 0xd1c   : > { %v1959_v41 = vpop.f32.mrb[58].mxu1 }
 0xd1d   : > { %v2057_v26 = vadd.f32 %v2456_v28, %v2045_v50  ;;  %v2811_v13 = vpop.f32.mrb[59].mxu1 }
 0xd1f   : > { %v2058_v36 = vmax.f32 %v2057_v26, 0.0 }
 0xd21   : > { %v2059_v60 = vpack.c.bf16 %v2058_v36, %v2058_v36 }
 0xd23   : > { %2849 = vmatmul.mubr.bf16.vlgmr.msra.gmra.mrb[60].mxu1 %v2059_v60 }
 0xd24   : > { %3304 = shalt.err (!%p3301_p9)
}
 0xd25   : > { %s3305_s24 = scalar_lea.hbm %s4238_s14, 128  ;;  %s3309_s7 = scalar_lea.hbm %s4369_s22, 256 }
 0xd26   : > { %p3306_p4 = scmp.ne.s32.totalorder %s4238_s14, %s3305_s24  ;;  %p3310_p5 = scmp.lt.u32.totalorder %s4238_s14, %s4369_s22 }
 0xd27   : > { %p3311_p2 = scmp.lt.u32.totalorder %s3309_s7, %s3305_s24  ;;  %p3313_p10 = scmp.lt.u32.totalorder %s3305_s24, %s4238_s14 }
 0xd28   : > { %p3307_p8 = pnand %p3306_p4, %p4370_p1 }
 0xd29   : > { %p3312_p7 = por %p3311_p2, %p3310_p5 }
 0xd2a   : > { %p3308_p0 = pneg %p3307_p8 }
 0xd2b   : > { %p3314_p11 = por %p3313_p10, %p3312_p7 }
 0xd2d   : > { %p3315_p12 = pnand %p3314_p11, %p3308_p0 }
 0xd2f   : > { %3318 = shalt.err (!%p3315_p12)
}
 0xd30   : > { %2883 = dma.vmem_to_hbm [thread:$0]  (%p4370_p1), %s2207_s13, 128, %s4238_s14, %s2180_s18  }
 0xd31   : > { %s4371_s28 = sld [smem:[#allocation32_spill]]  ;;  %s588_s10 = scalar_lea.vmem [#allocation16], %s2396_s1 }
 0xd32   : > { %s2193_s23 = sshll.u32 %s588_s10, 4  ;;  %s4372_s24 = sshll.u32 %s3523_s19, 7  ;;  %s4271_s23 = int_to_ptr.vmem [resolvable:$true] %s2193_s23 }
 0xd33   : > { %s4373_s0 = sld [smem:[#allocation33_spill]]  ;;  %s2175_s14 = scalar_lea.sflag [#allocation4], %s3780_s25 }
 0xd34   : > { %s3319_s1 = scalar_lea.vmem %s4271_s23, 128  ;;  %s3426_s19 = smov [#allocation16]  }
 0xd35   : > { %p3320_p13 = scmp.ne.s32.totalorder %s4271_s23, %s3319_s1  ;;  %s3323_s13 = sshll.u32 %s3426_s19, 4  ;;  %s3324_s13 = int_to_ptr.vmem [resolvable:$false] %s3323_s13 }
 0xd36   : > { %s3325_s18 = scalar_lea.vmem %s3324_s13, 256  ;;  %p3326_p9 = scmp.lt.s32.totalorder %s4271_s23, %s3324_s13 }
 0xd37   : > { %v2457_v1 = vld [vmem:[%s4371_s28] ss:$0 sm:$0xff]  ;;  %p3321_p3 = pnand %p3320_p13, %p4370_p1  ;;  %p3327_p4 = scmp.lt.s32.totalorder %s3325_s18, %s3319_s1 }
 0xd39   : > { %s4269_s2 = scalar_lea.hbm %s4373_s0, %s4372_s24  ;;  %p3322_p6 = pneg %p3321_p3 }
 0xd3a   : > { %p3328_p8 = por %p3327_p4, %p3326_p9 }
 0xd3c   : > { %p3329_p0 = pnand %p3328_p8, %p3322_p6 }
 0xdf6   : > { %v2165_v62 = vpop.f32.mrb[60].mxu1 }
 0xdf7   : > { %v2166_v25 = vadd.f32 %v2457_v1, %v2165_v62  ;;  %v2850_v37 = vpop.f32.mrb[61].mxu1 }
 0xdf8   : > { %v2168_v5 = vpop.f32.mrb[62].mxu1 }
 0xdf9   : > { %2171 = vst [vmem:[%s588_s10] sm:$0xff] %v2166_v25  ;;  %v2851_v29 = vpop.f32.mrb[63].mxu1 }
 0xdfa   : > { %3332 = shalt.err (!%p3329_p0)
}
 0xdfb   : > { %s3333_s25 = scalar_lea.hbm %s4269_s2, 128  ;;  %s3337_s28 = scalar_lea.hbm %s4373_s0, 256 }
 0xdfc   : > { %p3334_p5 = scmp.ne.s32.totalorder %s4269_s2, %s3333_s25  ;;  %p3338_p10 = scmp.lt.u32.totalorder %s4269_s2, %s4373_s0 }
 0xdfd   : > { %p3339_p11 = scmp.lt.u32.totalorder %s3337_s28, %s3333_s25  ;;  %p3341_p13 = scmp.lt.u32.totalorder %s3333_s25, %s4269_s2 }
 0xdfe   : > { %p3335_p2 = pnand %p3334_p5, %p4370_p1 }
 0xdff   : > { %p3340_p12 = por %p3339_p11, %p3338_p10 }
 0xe00   : > { %p3336_p7 = pneg %p3335_p2 }
 0xe01   : > { %p3342_p3 = por %p3341_p13, %p3340_p12 }
 0xe03   : > { %p3343_p6 = pnand %p3342_p3, %p3336_p7 }
 0xe05   : > { %3346 = shalt.err (!%p3343_p6)
}
 0xe06   : > { %2882 = dma.vmem_to_hbm [thread:$0]  (%p4370_p1), %s4271_s23, 128, %s4269_s2, %s2175_s14  }
 0xe07 PF: > { %s2218_s7 = sand.u32 1, %s3393_s29   ;;  %p4374_p9 = scmp.ne.s32.totalorder %s4354_s27, 0 }
 0xe08   : > { %p4375_p4 = scmp.ge.s32.totalorder %s3405_s16, 2  ;;  %s2219_s17 = scalar_lea.sflag [#allocation4], %s2218_s7 }
 0xe0a   : > { %p2913_p8 = pnand %p4375_p4, %p4374_p9 }
 0xe0c   : > { %3384 = dma.done.wait (!%p2913_p8), %s2219_s17, 128  }
 0xe0d   : > { %3386 = vsyncadd (!%p2913_p8), %s2219_s17, 4294967168  ;;  %s2228_s1 = scalar_lea.sflag [#allocation18], %s2218_s7 }
 0xe0e   : > { %3388 = dma.done.wait (!%p2913_p8), %s2228_s1, 128  }
 0xe0f   : > { %3390 = vsyncadd (!%p2913_p8), %s2228_s1, 4294967168  ;;  %p35_p1 = scmp.ge.s32.totalorder %s3710_s21, 4   ;;  %s4376_s29 = smov %s3397_s30 }
 0xe10   : > { %s4377_s30 = smov %s3401_s15  ;;  %s4378_s15 = smov %s3722_s3 }
 0xe11   : > { %s4379_s16 = smov %s3710_s21  ;;  %37 = sbr.rel (!%p35_p1) target bundleno = 21 (0x15), region = 162 }
 0xe18   :  { %2233 = vsyncpa [#allocation3], 1 }
 0xe19   :  { %2235 = vsyncpa [#allocation3 + $0x1], 1 }
 0xe1a   :  { %2236 = vsyncpa [#allocation6], 1 }
 0xe1b   :  { %2237 = vsyncpa [#allocation9], 1 }
 0xe1c   :  { %2238 = vsyncpa [#allocation12], 1 }
 0xe1d   :  { %2239 = vsyncpa [#allocation15], 1 }
 0xe1e   :  { %2240 = vsyncpa [#allocation4], 1 }
 0xe1f   :  { %2242 = vsyncpa [#allocation4 + $0x1], 1 }
 0xe20   :  { %2243 = vsyncpa [#allocation18], 1 }
 0xe21   :  { %2245 = vsyncpa [#allocation18 + $0x1], 1 }

</bundles_post_ra>
